<compile_context>
chip_gen: v6e
topology: v6e:2x2x1
jax: 0.10.0
libtpu: 0.0.40
codegen_flags: <defaults>
</compile_context>

<pallas_src>
import jax
import jax.numpy as jnp
from jax.experimental import pallas as pl
from jax.experimental.pallas import tpu as pltpu


def _band_select(W, K, P, dtype=jnp.float32):
    # sel[w_src, w_out, k] = 1  iff  w_src == w_out + k - P
    w_src = jnp.arange(W)[:, None, None]
    w_out = jnp.arange(W)[None, :, None]
    k = jnp.arange(K)[None, None, :]
    return (w_src == w_out + k - P).astype(dtype)


def _make_kernel(BT, H, W, Cin, Hid, Cout, K, P, Rd, use_residual, mxu_dtype):
    EP = 1                                   # expand conv is fixed 3x3 / pad 1
    Wc, Wh, Wo = W * Cin, W * Hid, W * Cout

    def kernel(x_ref, aexp_ref, es_ref, eb_ref, dmat_ref, ds_ref, db_ref,
               wse1_ref, bse1_ref, wse2_ref, bse2_ref, bproj_ref, ps_ref,
               pb_ref, out_ref, xh_ref, yh_ref):
        xv = x_ref[...]                                    # (BT, H, W*Cin)

        # ---- expand: 3x3 conv (pad 1) + folded BN + SiLU, one wide-K matmul
        xh_ref[...] = jnp.zeros(xh_ref.shape, xh_ref.dtype)
        xh_ref[:, EP:EP + H, :] = xv
        xcat = jnp.concatenate(
            [xh_ref[:, kh:kh + H, :].reshape(BT * H, Wc) for kh in range(3)],
            axis=-1)                                       # (BT*H, 3*W*Cin)
        y = jnp.dot(xcat.astype(mxu_dtype), aexp_ref[...].astype(mxu_dtype),
                    preferred_element_type=jnp.float32)    # (BT*H, W*Hid)
        y = y * es_ref[...] + eb_ref[...]
        y = y * jax.nn.sigmoid(y)                          # SiLU

        # ---- depthwise KxK conv (pad P) + folded BN + SiLU, one matmul
        yh_ref[...] = jnp.zeros(yh_ref.shape, yh_ref.dtype)
        yh_ref[:, P:P + H, :] = y.reshape(BT, H, Wh)
        ycat = jnp.concatenate(
            [yh_ref[:, kh:kh + H, :].reshape(BT * H, Wh) for kh in range(K)],
            axis=-1)                                       # (BT*H, K*W*Hid)
        z = jnp.dot(ycat.astype(mxu_dtype), dmat_ref[...].astype(mxu_dtype),
                    preferred_element_type=jnp.float32)    # (BT*H, W*Hid)
        z = z * ds_ref[...] + db_ref[...]
        z = z * jax.nn.sigmoid(z)                          # SiLU
        z3 = z.reshape(BT, H, Wh)

        # ---- squeeze-excitation (VPU/XLU; tiny FCs kept off the MXU)
        s1 = jnp.sum(z3, axis=1)                           # (BT, W*Hid)
        pooled = s1[:, 0:Hid]
        for w in range(1, W):
            pooled = pooled + s1[:, w * Hid:(w + 1) * Hid]
        pooled = pooled * (1.0 / (H * W))                  # (BT, Hid)

        wse1 = wse1_ref[...]                               # (Rd, Hid)
        bse1 = bse1_ref[...]                               # (1, Rd)
        wse2 = wse2_ref[...]                               # (Rd, W*Hid)
        g_pre = bse2_ref[...]                              # (1, W*Hid)
        for r in range(Rd):
            hr = jnp.sum(pooled * wse1[r:r + 1, :], axis=1, keepdims=True)
            hr = hr + bse1[:, r:r + 1]                     # (BT, 1)
            hr = hr * jax.nn.sigmoid(hr)                   # SiLU
            g_pre = g_pre + hr * wse2[r:r + 1, :]
        gate = jax.nn.sigmoid(g_pre)                       # (BT, W*Hid)
        zs = (z3 * gate[:, None, :]).reshape(BT * H, Wh)

        # ---- 1x1 projection (block-diag matmul -> lane-dense slab) + BN
        proj = jnp.dot(zs.astype(mxu_dtype), bproj_ref[...].astype(mxu_dtype),
                       preferred_element_type=jnp.float32)  # (BT*H, W*Cout)
        out = proj * ps_ref[...] + pb_ref[...]
        if use_residual:
            out = out + xv.reshape(BT * H, Wc)
        # TODO(synk): stochastic depth (training-mode) is identity in eval.
        out_ref[...] = out.reshape(BT, H, Wo).astype(out_ref.dtype)

    return kernel


def inverted_residual_block(x_nhwc, params, *, kernel_size, stride, padding,
                            use_residual, batch_tile=None,
                            mxu_dtype=jnp.float32):
    # TODO(synk): training-mode BatchNorm (batch stats), stochastic-depth
    # dropout, stride>1 and the expand_ratio==1 (no expand conv) path are not
    # implemented; this reproduces eval-mode semantics of the reference config.
    N, H, W, Cin = x_nhwc.shape
    K, P = kernel_size, padding
    assert stride == 1, "TODO(synk): strided depthwise conv not implemented"
    assert 2 * P == K - 1, "same-size depthwise output required"
    w_exp = params["w_exp"]                    # (3, 3, Cin, Hid)  HWIO
    Hid = w_exp.shape[-1]
    Rd = params["w_se1"].shape[-1]
    Cout = params["w_proj"].shape[-1]
    if use_residual:
        assert Cin == Cout and stride == 1, "residual requires Cin==Cout, s=1"
    BT = N if batch_tile is None else batch_tile
    assert N % BT == 0

    f32 = jnp.float32
    # Banded weight matrices: W-direction zero padding folded into the band.
    sel3 = _band_select(W, 3, 1, f32)
    a_exp = jnp.einsum('vwk,hkco->hvcwo', sel3, w_exp
                       ).reshape(3 * W * Cin, W * Hid)
    selK = _band_select(W, K, P, f32)
    d_mat = jnp.einsum('vwk,hko,po->hvpwo', selK, params["w_dw"],
                       jnp.eye(Hid, dtype=f32)
                       ).reshape(K * W * Hid, W * Hid)
    b_proj = jnp.einsum('vw,oc->vowc', jnp.eye(W, dtype=f32),
                        params["w_proj"]).reshape(W * Hid, W * Cout)

    tile = lambda v: jnp.tile(v, (1, W))       # per-channel -> lane-packed
    es_t, eb_t = tile(params["es"]), tile(params["eb"])
    ds_t, db_t = tile(params["ds"]), tile(params["db"])
    ps_t, pb_t = tile(params["ps"]), tile(params["pb"])
    wse2_t, bse2_t = tile(params["w_se2"]), tile(params["b_se2"])
    wse1_t = params["w_se1"].T                 # (Rd, Hid)

    x3 = x_nhwc.reshape(N, H, W * Cin)         # lane-dense input slab (free)

    kernel = _make_kernel(BT, H, W, Cin, Hid, Cout, K, P, Rd, use_residual,
                          mxu_dtype)

    def full(shape):
        return pl.BlockSpec(shape, lambda n, _s=len(shape): (0,) * _s)

    in_specs = [
        pl.BlockSpec((BT, H, W * Cin), lambda n: (n, 0, 0)),   # x
        full((3 * W * Cin, W * Hid)),                          # a_exp
        full((1, W * Hid)), full((1, W * Hid)),                # es, eb
        full((K * W * Hid, W * Hid)),                          # d_mat
        full((1, W * Hid)), full((1, W * Hid)),                # ds, db
        full((Rd, Hid)), full((1, Rd)),                        # w_se1^T, b_se1
        full((Rd, W * Hid)), full((1, W * Hid)),               # w_se2, b_se2
        full((W * Hid, W * Cout)),                             # b_proj
        full((1, W * Cout)), full((1, W * Cout)),              # ps, pb
    ]

    out = pl.pallas_call(
        kernel,
        out_shape=jax.ShapeDtypeStruct((N, H, W * Cout), f32),
        grid_spec=pltpu.PrefetchScalarGridSpec(
            num_scalar_prefetch=0,
            grid=(N // BT,),
            in_specs=in_specs,
            out_specs=pl.BlockSpec((BT, H, W * Cout), lambda n: (n, 0, 0)),
            scratch_shapes=[
                pltpu.VMEM((BT, H + 2, W * Cin), f32),      # expand H-halo
                pltpu.VMEM((BT, H + 2 * P, W * Hid), f32),  # depthwise H-halo
            ]),
        compiler_params=pltpu.CompilerParams(
            dimension_semantics=("parallel",)),
    )(x3, a_exp, es_t, eb_t, d_mat, ds_t, db_t, wse1_t, params["b_se1"],
      wse2_t, bse2_t, b_proj, ps_t, pb_t)
    return out.reshape(N, H, W, Cout)


def reference(x_nhwc, params, kernel_size, stride, padding, use_residual):
    """Pure-JAX reference for correctness checking (eval-mode semantics)."""
    dn = ("NHWC", "HWIO", "NHWC")
    Hid = params["w_exp"].shape[-1]
    y = jax.lax.conv_general_dilated(x_nhwc, params["w_exp"], (1, 1),
                                     ((1, 1), (1, 1)), dimension_numbers=dn)
    y = y * params["es"] + params["eb"]
    y = y * jax.nn.sigmoid(y)
    wdw = params["w_dw"].reshape(kernel_size, kernel_size, 1, Hid)
    z = jax.lax.conv_general_dilated(
        y, wdw, (stride, stride), ((padding, padding), (padding, padding)),
        dimension_numbers=dn, feature_group_count=Hid)
    z = z * params["ds"] + params["db"]
    z = z * jax.nn.sigmoid(z)
    pooled = jnp.mean(z, axis=(1, 2), keepdims=True)          # (N,1,1,Hid)
    h = jnp.matmul(pooled, params["w_se1"]) + params["b_se1"]
    h = h * jax.nn.sigmoid(h)
    g = jax.nn.sigmoid(jnp.matmul(h, params["w_se2"]) + params["b_se2"])
    zs = z * g
    out = jnp.matmul(zs, params["w_proj"]) * params["ps"] + params["pb"]
    if use_residual:
        out = out + x_nhwc
    return out


if __name__ == "__main__":
    # Module config (matches InvertedResidualBlock __init__):
    N, Cin, H, W = 2, 8, 16, 16
    kernel_size, stride, padding, expand_ratio, reduction = 3, 1, 1, 2, 4
    Cout = Cin
    use_residual = (Cin == Cout and stride == 1)
    Hid = Cin * expand_ratio                     # expand=True since ratio>1
    Rd = int(Cin / reduction)

    key = jax.random.PRNGKey(0)
    keys = jax.random.split(key, 12)

    def nrm(k, shape, scale=0.1):
        return scale * jax.random.normal(k, shape, jnp.float32)

    def bn_fold(k, C, eps=1e-5):
        k1, k2, k3, k4 = jax.random.split(k, 4)
        gamma = 1.0 + 0.1 * jax.random.normal(k1, (C,), jnp.float32)
        beta = 0.1 * jax.random.normal(k2, (C,), jnp.float32)
        mean = 0.1 * jax.random.normal(k3, (C,), jnp.float32)
        var = 0.5 + jax.random.uniform(k4, (C,), jnp.float32)
        s = gamma / jnp.sqrt(var + eps)
        b = beta - mean * s
        return s.reshape(1, C), b.reshape(1, C)

    es, eb = bn_fold(keys[7], Hid)    # expand_conv BN
    ds, db = bn_fold(keys[8], Hid)    # depthwise BN
    ps, pb = bn_fold(keys[9], Cout)   # projection BN

    params = dict(
        w_exp=nrm(keys[0], (3, 3, Cin, Hid)),                  # expand (HWIO)
        w_dw=nrm(keys[1], (kernel_size, kernel_size, Hid)),    # depthwise
        w_se1=nrm(keys[2], (Hid, Rd)), b_se1=nrm(keys[3], (1, Rd)),
        w_se2=nrm(keys[4], (Rd, Hid)), b_se2=nrm(keys[5], (1, Hid)),
        w_proj=nrm(keys[6], (Hid, Cout)),                      # 1x1 projection
        es=es, eb=eb, ds=ds, db=db, ps=ps, pb=pb,
    )

    # PyTorch-convention NCHW input; transpose to NHWC for the kernel.
    x_nchw = jax.random.normal(keys[10], (N, Cin, H, W), jnp.float32)
    x_nhwc = jnp.transpose(x_nchw, (0, 2, 3, 1))

    ref = reference(x_nhwc, params, kernel_size, stride, padding, use_residual)

    # f32 MXU path: exact check against the JAX reference.
    out_f32 = inverted_residual_block(
        x_nhwc, params, kernel_size=kernel_size, stride=stride,
        padding=padding, use_residual=use_residual, mxu_dtype=jnp.float32)
    out_f32 = jax.block_until_ready(out_f32)
    assert out_f32.shape == (N, H, W, Cout)
    assert jnp.allclose(out_f32, ref, atol=1e-4, rtol=1e-4), \
        "f32 mismatch vs JAX reference"

    # bf16 MXU path (v6e/v7x fast path): looser tolerance, f32 accumulation.
    out_bf16 = inverted_residual_block(
        x_nhwc, params, kernel_size=kernel_size, stride=stride,
        padding=padding, use_residual=use_residual, mxu_dtype=jnp.bfloat16)
    out_bf16 = jax.block_until_ready(out_bf16)
    assert jnp.allclose(out_bf16, ref, atol=2e-2, rtol=2e-2), \
        "bf16 mismatch vs JAX reference"

    out_nchw = jnp.transpose(out_f32, (0, 3, 1, 2))            # back to NCHW
    assert out_nchw.shape == (N, Cout, H, W)
    print("KERNEL_OK")
</pallas_src>

<mosaic_0001>
module attributes {stable_mosaic.version = 11 : i64} {
  func.func @kernel(%arg0: i32, %arg1: memref<2x16x128xf32, #tpu.memory_space<vmem>>, %arg2: memref<384x256xf32, #tpu.memory_space<vmem>>, %arg3: memref<1x256xf32, #tpu.memory_space<vmem>>, %arg4: memref<1x256xf32, #tpu.memory_space<vmem>>, %arg5: memref<768x256xf32, #tpu.memory_space<vmem>>, %arg6: memref<1x256xf32, #tpu.memory_space<vmem>>, %arg7: memref<1x256xf32, #tpu.memory_space<vmem>>, %arg8: memref<2x16xf32, #tpu.memory_space<vmem>>, %arg9: memref<1x2xf32, #tpu.memory_space<vmem>>, %arg10: memref<2x256xf32, #tpu.memory_space<vmem>>, %arg11: memref<1x256xf32, #tpu.memory_space<vmem>>, %arg12: memref<256x128xf32, #tpu.memory_space<vmem>>, %arg13: memref<1x128xf32, #tpu.memory_space<vmem>>, %arg14: memref<1x128xf32, #tpu.memory_space<vmem>>, %arg15: memref<2x16x128xf32, #tpu.memory_space<vmem>>, %arg16: memref<2x18x128xf32, #tpu.memory_space<vmem>>, %arg17: memref<2x18x256xf32, #tpu.memory_space<vmem>>) attributes {dimension_semantics = [#tpu.dimension_semantics<parallel>], iteration_bounds = array<i64: 1>, scalar_prefetch = 0 : i64, scratch_operands = 2 : i64, tpu.core_type = #tpu.core_type<tc>, window_params = [{transform_indices = @transform_0, window_bounds = array<i64: 2, 16, 128>}, {pipeline_mode = #tpu.pipeline_mode<synchronous>, transform_indices = @transform_1, window_bounds = array<i64: 384, 256>}, {pipeline_mode = #tpu.pipeline_mode<synchronous>, transform_indices = @transform_2, window_bounds = array<i64: 1, 256>}, {pipeline_mode = #tpu.pipeline_mode<synchronous>, transform_indices = @transform_3, window_bounds = array<i64: 1, 256>}, {pipeline_mode = #tpu.pipeline_mode<synchronous>, transform_indices = @transform_4, window_bounds = array<i64: 768, 256>}, {pipeline_mode = #tpu.pipeline_mode<synchronous>, transform_indices = @transform_5, window_bounds = array<i64: 1, 256>}, {pipeline_mode = #tpu.pipeline_mode<synchronous>, transform_indices = @transform_6, window_bounds = array<i64: 1, 256>}, {pipeline_mode = #tpu.pipeline_mode<synchronous>, transform_indices = @transform_7, window_bounds = array<i64: 2, 16>}, {pipeline_mode = #tpu.pipeline_mode<synchronous>, transform_indices = @transform_8, window_bounds = array<i64: 1, 2>}, {pipeline_mode = #tpu.pipeline_mode<synchronous>, transform_indices = @transform_9, window_bounds = array<i64: 2, 256>}, {pipeline_mode = #tpu.pipeline_mode<synchronous>, transform_indices = @transform_10, window_bounds = array<i64: 1, 256>}, {pipeline_mode = #tpu.pipeline_mode<synchronous>, transform_indices = @transform_11, window_bounds = array<i64: 256, 128>}, {pipeline_mode = #tpu.pipeline_mode<synchronous>, transform_indices = @transform_12, window_bounds = array<i64: 1, 128>}, {pipeline_mode = #tpu.pipeline_mode<synchronous>, transform_indices = @transform_13, window_bounds = array<i64: 1, 128>}, {transform_indices = @transform_14, window_bounds = array<i64: 2, 16, 128>}]} {
    %c0 = arith.constant 0 : index
    %c0_0 = arith.constant 0 : index
    %c0_1 = arith.constant 0 : index
    %0 = vector.load %arg1[%c0, %c0_0, %c0_1] : memref<2x16x128xf32, #tpu.memory_space<vmem>>, vector<2x16x128xf32>
    %cst = arith.constant 0.000000e+00 : f32
    %1 = vector.broadcast %cst : f32 to vector<2x18x128xf32>
    %c0_2 = arith.constant 0 : index
    %c0_3 = arith.constant 0 : index
    %c0_4 = arith.constant 0 : index
    %2 = vector.load %arg16[%c0_2, %c0_3, %c0_4] : memref<2x18x128xf32, #tpu.memory_space<vmem>>, vector<2x18x128xf32>
    tpu.vector_store %arg16[%c0_2, %c0_3, %c0_4], %1 {strides = array<i32>} : memref<2x18x128xf32, #tpu.memory_space<vmem>>, vector<2x18x128xf32>,
    %c0_5 = arith.constant 0 : index
    %c1 = arith.constant 1 : index
    %c0_6 = arith.constant 0 : index
    %3 = vector.load %arg16[%c0_5, %c1, %c0_6] : memref<2x18x128xf32, #tpu.memory_space<vmem>>, vector<2x16x128xf32>
    tpu.vector_store %arg16[%c0_5, %c1, %c0_6], %0 {strides = array<i32>} : memref<2x18x128xf32, #tpu.memory_space<vmem>>, vector<2x16x128xf32>,
    %c0_7 = arith.constant 0 : index
    %c0_8 = arith.constant 0 : index
    %c0_9 = arith.constant 0 : index
    %4 = vector.load %arg16[%c0_7, %c0_8, %c0_9] : memref<2x18x128xf32, #tpu.memory_space<vmem>>, vector<2x16x128xf32>
    %5 = vector.shape_cast %4 : vector<2x16x128xf32> to vector<32x128xf32>
    %c0_10 = arith.constant 0 : index
    %c1_11 = arith.constant 1 : index
    %c0_12 = arith.constant 0 : index
    %6 = vector.load %arg16[%c0_10, %c1_11, %c0_12] : memref<2x18x128xf32, #tpu.memory_space<vmem>>, vector<2x16x128xf32>
    %7 = vector.shape_cast %6 : vector<2x16x128xf32> to vector<32x128xf32>
    %c0_13 = arith.constant 0 : index
    %c2 = arith.constant 2 : index
    %c0_14 = arith.constant 0 : index
    %8 = vector.load %arg16[%c0_13, %c2, %c0_14] : memref<2x18x128xf32, #tpu.memory_space<vmem>>, vector<2x16x128xf32>
    %9 = vector.shape_cast %8 : vector<2x16x128xf32> to vector<32x128xf32>
    %10 = tpu.concatenate %5, %7, %9 in 1 : vector<32x128xf32>, vector<32x128xf32>, vector<32x128xf32> -> vector<32x384xf32>
    %c0_15 = arith.constant 0 : index
    %c0_16 = arith.constant 0 : index
    %11 = vector.load %arg2[%c0_15, %c0_16] : memref<384x256xf32, #tpu.memory_space<vmem>>, vector<384x256xf32>
    %cst_17 = arith.constant dense<0.000000e+00> : vector<32x256xf32>
    %12 = tpu.matmul %10, %11, %cst_17 {dimension_numbers = #tpu.dot_dimension_numbers<[1], [0], [0], [1], [0, 0, 1, 1], [], []>} : vector<32x384xf32>, vector<384x256xf32>, vector<32x256xf32> -> vector<32x256xf32>
    %c0_18 = arith.constant 0 : index
    %c0_19 = arith.constant 0 : index
    %13 = vector.load %arg3[%c0_18, %c0_19] : memref<1x256xf32, #tpu.memory_space<vmem>>, vector<1x256xf32>
    %14 = vector.broadcast %13 : vector<1x256xf32> to vector<32x256xf32>
    %15 = arith.mulf %12, %14 : vector<32x256xf32>
    %c0_20 = arith.constant 0 : index
    %c0_21 = arith.constant 0 : index
    %16 = vector.load %arg4[%c0_20, %c0_21] : memref<1x256xf32, #tpu.memory_space<vmem>>, vector<1x256xf32>
    %17 = vector.broadcast %16 : vector<1x256xf32> to vector<32x256xf32>
    %18 = arith.addf %15, %17 : vector<32x256xf32>
    %19 = arith.negf %18 : vector<32x256xf32>
    %20 = math.exp %19 : vector<32x256xf32>
    %cst_22 = arith.constant 1.000000e+00 : f32
    %21 = vector.broadcast %cst_22 : f32 to vector<32x256xf32>
    %22 = arith.addf %21, %20 : vector<32x256xf32>
    %23 = arith.divf %21, %22 : vector<32x256xf32>
    %24 = arith.mulf %18, %23 : vector<32x256xf32>
    %cst_23 = arith.constant 0.000000e+00 : f32
    %25 = vector.broadcast %cst_23 : f32 to vector<2x18x256xf32>
    %c0_24 = arith.constant 0 : index
    %c0_25 = arith.constant 0 : index
    %c0_26 = arith.constant 0 : index
    %26 = vector.load %arg17[%c0_24, %c0_25, %c0_26] : memref<2x18x256xf32, #tpu.memory_space<vmem>>, vector<2x18x256xf32>
    tpu.vector_store %arg17[%c0_24, %c0_25, %c0_26], %25 {strides = array<i32>} : memref<2x18x256xf32, #tpu.memory_space<vmem>>, vector<2x18x256xf32>,
    %27 = vector.shape_cast %24 : vector<32x256xf32> to vector<2x16x256xf32>
    %c0_27 = arith.constant 0 : index
    %c1_28 = arith.constant 1 : index
    %c0_29 = arith.constant 0 : index
    %28 = vector.load %arg17[%c0_27, %c1_28, %c0_29] : memref<2x18x256xf32, #tpu.memory_space<vmem>>, vector<2x16x256xf32>
    tpu.vector_store %arg17[%c0_27, %c1_28, %c0_29], %27 {strides = array<i32>} : memref<2x18x256xf32, #tpu.memory_space<vmem>>, vector<2x16x256xf32>,
    %c0_30 = arith.constant 0 : index
    %c0_31 = arith.constant 0 : index
    %c0_32 = arith.constant 0 : index
    %29 = vector.load %arg17[%c0_30, %c0_31, %c0_32] : memref<2x18x256xf32, #tpu.memory_space<vmem>>, vector<2x16x256xf32>
    %30 = vector.shape_cast %29 : vector<2x16x256xf32> to vector<32x256xf32>
    %c0_33 = arith.constant 0 : index
    %c1_34 = arith.constant 1 : index
    %c0_35 = arith.constant 0 : index
    %31 = vector.load %arg17[%c0_33, %c1_34, %c0_35] : memref<2x18x256xf32, #tpu.memory_space<vmem>>, vector<2x16x256xf32>
    %32 = vector.shape_cast %31 : vector<2x16x256xf32> to vector<32x256xf32>
    %c0_36 = arith.constant 0 : index
    %c2_37 = arith.constant 2 : index
    %c0_38 = arith.constant 0 : index
    %33 = vector.load %arg17[%c0_36, %c2_37, %c0_38] : memref<2x18x256xf32, #tpu.memory_space<vmem>>, vector<2x16x256xf32>
    %34 = vector.shape_cast %33 : vector<2x16x256xf32> to vector<32x256xf32>
    %35 = tpu.concatenate %30, %32, %34 in 1 : vector<32x256xf32>, vector<32x256xf32>, vector<32x256xf32> -> vector<32x768xf32>
    %c0_39 = arith.constant 0 : index
    %c0_40 = arith.constant 0 : index
    %36 = vector.load %arg5[%c0_39, %c0_40] : memref<768x256xf32, #tpu.memory_space<vmem>>, vector<768x256xf32>
    %cst_41 = arith.constant dense<0.000000e+00> : vector<32x256xf32>
    %37 = tpu.matmul %35, %36, %cst_41 {dimension_numbers = #tpu.dot_dimension_numbers<[1], [0], [0], [1], [0, 0, 1, 1], [], []>} : vector<32x768xf32>, vector<768x256xf32>, vector<32x256xf32> -> vector<32x256xf32>
    %c0_42 = arith.constant 0 : index
    %c0_43 = arith.constant 0 : index
    %38 = vector.load %arg6[%c0_42, %c0_43] : memref<1x256xf32, #tpu.memory_space<vmem>>, vector<1x256xf32>
    %39 = vector.broadcast %38 : vector<1x256xf32> to vector<32x256xf32>
    %40 = arith.mulf %37, %39 : vector<32x256xf32>
    %c0_44 = arith.constant 0 : index
    %c0_45 = arith.constant 0 : index
    %41 = vector.load %arg7[%c0_44, %c0_45] : memref<1x256xf32, #tpu.memory_space<vmem>>, vector<1x256xf32>
    %42 = vector.broadcast %41 : vector<1x256xf32> to vector<32x256xf32>
    %43 = arith.addf %40, %42 : vector<32x256xf32>
    %44 = arith.negf %43 : vector<32x256xf32>
    %45 = math.exp %44 : vector<32x256xf32>
    %cst_46 = arith.constant 1.000000e+00 : f32
    %46 = vector.broadcast %cst_46 : f32 to vector<32x256xf32>
    %47 = arith.addf %46, %45 : vector<32x256xf32>
    %48 = arith.divf %46, %47 : vector<32x256xf32>
    %49 = arith.mulf %43, %48 : vector<32x256xf32>
    %50 = vector.shape_cast %49 : vector<32x256xf32> to vector<2x16x256xf32>
    %cst_47 = arith.constant dense<0.000000e+00> : vector<2x256xf32>
    %51 = vector.multi_reduction <add>, %50, %cst_47 [1] : vector<2x16x256xf32> to vector<2x256xf32>
    %52 = vector.extract_strided_slice %51 {offsets = [0, 0], sizes = [2, 16], strides = [1, 1]} : vector<2x256xf32> to vector<2x16xf32>
    %53 = vector.extract_strided_slice %51 {offsets = [0, 16], sizes = [2, 16], strides = [1, 1]} : vector<2x256xf32> to vector<2x16xf32>
    %54 = arith.addf %52, %53 : vector<2x16xf32>
    %55 = vector.extract_strided_slice %51 {offsets = [0, 32], sizes = [2, 16], strides = [1, 1]} : vector<2x256xf32> to vector<2x16xf32>
    %56 = arith.addf %54, %55 : vector<2x16xf32>
    %57 = vector.extract_strided_slice %51 {offsets = [0, 48], sizes = [2, 16], strides = [1, 1]} : vector<2x256xf32> to vector<2x16xf32>
    %58 = arith.addf %56, %57 : vector<2x16xf32>
    %59 = vector.extract_strided_slice %51 {offsets = [0, 64], sizes = [2, 16], strides = [1, 1]} : vector<2x256xf32> to vector<2x16xf32>
    %60 = arith.addf %58, %59 : vector<2x16xf32>
    %61 = vector.extract_strided_slice %51 {offsets = [0, 80], sizes = [2, 16], strides = [1, 1]} : vector<2x256xf32> to vector<2x16xf32>
    %62 = arith.addf %60, %61 : vector<2x16xf32>
    %63 = vector.extract_strided_slice %51 {offsets = [0, 96], sizes = [2, 16], strides = [1, 1]} : vector<2x256xf32> to vector<2x16xf32>
    %64 = arith.addf %62, %63 : vector<2x16xf32>
    %65 = vector.extract_strided_slice %51 {offsets = [0, 112], sizes = [2, 16], strides = [1, 1]} : vector<2x256xf32> to vector<2x16xf32>
    %66 = arith.addf %64, %65 : vector<2x16xf32>
    %67 = vector.extract_strided_slice %51 {offsets = [0, 128], sizes = [2, 16], strides = [1, 1]} : vector<2x256xf32> to vector<2x16xf32>
    %68 = arith.addf %66, %67 : vector<2x16xf32>
    %69 = vector.extract_strided_slice %51 {offsets = [0, 144], sizes = [2, 16], strides = [1, 1]} : vector<2x256xf32> to vector<2x16xf32>
    %70 = arith.addf %68, %69 : vector<2x16xf32>
    %71 = vector.extract_strided_slice %51 {offsets = [0, 160], sizes = [2, 16], strides = [1, 1]} : vector<2x256xf32> to vector<2x16xf32>
    %72 = arith.addf %70, %71 : vector<2x16xf32>
    %73 = vector.extract_strided_slice %51 {offsets = [0, 176], sizes = [2, 16], strides = [1, 1]} : vector<2x256xf32> to vector<2x16xf32>
    %74 = arith.addf %72, %73 : vector<2x16xf32>
    %75 = vector.extract_strided_slice %51 {offsets = [0, 192], sizes = [2, 16], strides = [1, 1]} : vector<2x256xf32> to vector<2x16xf32>
    %76 = arith.addf %74, %75 : vector<2x16xf32>
    %77 = vector.extract_strided_slice %51 {offsets = [0, 208], sizes = [2, 16], strides = [1, 1]} : vector<2x256xf32> to vector<2x16xf32>
    %78 = arith.addf %76, %77 : vector<2x16xf32>
    %79 = vector.extract_strided_slice %51 {offsets = [0, 224], sizes = [2, 16], strides = [1, 1]} : vector<2x256xf32> to vector<2x16xf32>
    %80 = arith.addf %78, %79 : vector<2x16xf32>
    %81 = vector.extract_strided_slice %51 {offsets = [0, 240], sizes = [2, 16], strides = [1, 1]} : vector<2x256xf32> to vector<2x16xf32>
    %82 = arith.addf %80, %81 : vector<2x16xf32>
    %cst_48 = arith.constant 3.906250e-03 : f32
    %83 = vector.broadcast %cst_48 : f32 to vector<2x16xf32>
    %84 = arith.mulf %82, %83 : vector<2x16xf32>
    %c0_49 = arith.constant 0 : index
    %c0_50 = arith.constant 0 : index
    %85 = vector.load %arg8[%c0_49, %c0_50] : memref<2x16xf32, #tpu.memory_space<vmem>>, vector<2x16xf32>
    %c0_51 = arith.constant 0 : index
    %c0_52 = arith.constant 0 : index
    %86 = vector.load %arg9[%c0_51, %c0_52] : memref<1x2xf32, #tpu.memory_space<vmem>>, vector<1x2xf32>
    %c0_53 = arith.constant 0 : index
    %c0_54 = arith.constant 0 : index
    %87 = vector.load %arg10[%c0_53, %c0_54] : memref<2x256xf32, #tpu.memory_space<vmem>>, vector<2x256xf32>
    %c0_55 = arith.constant 0 : index
    %c0_56 = arith.constant 0 : index
    %88 = vector.load %arg11[%c0_55, %c0_56] : memref<1x256xf32, #tpu.memory_space<vmem>>, vector<1x256xf32>
    %89 = vector.extract_strided_slice %85 {offsets = [0, 0], sizes = [1, 16], strides = [1, 1]} : vector<2x16xf32> to vector<1x16xf32>
    %90 = vector.broadcast %89 : vector<1x16xf32> to vector<2x16xf32>
    %91 = arith.mulf %84, %90 : vector<2x16xf32>
    %cst_57 = arith.constant dense<0.000000e+00> : vector<2xf32>
    %92 = vector.multi_reduction <add>, %91, %cst_57 [1] : vector<2x16xf32> to vector<2xf32>
    %93 = vector.shape_cast %92 : vector<2xf32> to vector<2x1xf32>
    %94 = vector.extract_strided_slice %86 {offsets = [0, 0], sizes = [1, 1], strides = [1, 1]} : vector<1x2xf32> to vector<1x1xf32>
    %95 = vector.broadcast %94 : vector<1x1xf32> to vector<2x1xf32>
    %96 = arith.addf %93, %95 : vector<2x1xf32>
    %97 = arith.negf %96 : vector<2x1xf32>
    %98 = math.exp %97 : vector<2x1xf32>
    %cst_58 = arith.constant 1.000000e+00 : f32
    %99 = vector.broadcast %cst_58 : f32 to vector<2x1xf32>
    %100 = arith.addf %99, %98 : vector<2x1xf32>
    %101 = arith.divf %99, %100 : vector<2x1xf32>
    %102 = arith.mulf %96, %101 : vector<2x1xf32>
    %103 = vector.extract_strided_slice %87 {offsets = [0, 0], sizes = [1, 256], strides = [1, 1]} : vector<2x256xf32> to vector<1x256xf32>
    %104 = vector.broadcast %102 : vector<2x1xf32> to vector<2x256xf32>
    %105 = vector.broadcast %103 : vector<1x256xf32> to vector<2x256xf32>
    %106 = arith.mulf %104, %105 : vector<2x256xf32>
    %107 = vector.broadcast %88 : vector<1x256xf32> to vector<2x256xf32>
    %108 = arith.addf %107, %106 : vector<2x256xf32>
    %109 = vector.extract_strided_slice %85 {offsets = [1, 0], sizes = [1, 16], strides = [1, 1]} : vector<2x16xf32> to vector<1x16xf32>
    %110 = vector.broadcast %109 : vector<1x16xf32> to vector<2x16xf32>
    %111 = arith.mulf %84, %110 : vector<2x16xf32>
    %cst_59 = arith.constant dense<0.000000e+00> : vector<2xf32>
    %112 = vector.multi_reduction <add>, %111, %cst_59 [1] : vector<2x16xf32> to vector<2xf32>
    %113 = vector.shape_cast %112 : vector<2xf32> to vector<2x1xf32>
    %114 = vector.extract_strided_slice %86 {offsets = [0, 1], sizes = [1, 1], strides = [1, 1]} : vector<1x2xf32> to vector<1x1xf32>
    %115 = vector.broadcast %114 : vector<1x1xf32> to vector<2x1xf32>
    %116 = arith.addf %113, %115 : vector<2x1xf32>
    %117 = arith.negf %116 : vector<2x1xf32>
    %118 = math.exp %117 : vector<2x1xf32>
    %cst_60 = arith.constant 1.000000e+00 : f32
    %119 = vector.broadcast %cst_60 : f32 to vector<2x1xf32>
    %120 = arith.addf %119, %118 : vector<2x1xf32>
    %121 = arith.divf %119, %120 : vector<2x1xf32>
    %122 = arith.mulf %116, %121 : vector<2x1xf32>
    %123 = vector.extract_strided_slice %87 {offsets = [1, 0], sizes = [1, 256], strides = [1, 1]} : vector<2x256xf32> to vector<1x256xf32>
    %124 = vector.broadcast %122 : vector<2x1xf32> to vector<2x256xf32>
    %125 = vector.broadcast %123 : vector<1x256xf32> to vector<2x256xf32>
    %126 = arith.mulf %124, %125 : vector<2x256xf32>
    %127 = arith.addf %108, %126 : vector<2x256xf32>
    %128 = arith.negf %127 : vector<2x256xf32>
    %129 = math.exp %128 : vector<2x256xf32>
    %cst_61 = arith.constant 1.000000e+00 : f32
    %130 = vector.broadcast %cst_61 : f32 to vector<2x256xf32>
    %131 = arith.addf %130, %129 : vector<2x256xf32>
    %132 = arith.divf %130, %131 : vector<2x256xf32>
    %133 = vector.shape_cast %132 : vector<2x256xf32> to vector<2x1x256xf32>
    %134 = vector.broadcast %133 : vector<2x1x256xf32> to vector<2x16x256xf32>
    %135 = arith.mulf %50, %134 : vector<2x16x256xf32>
    %136 = vector.shape_cast %135 : vector<2x16x256xf32> to vector<32x256xf32>
    %c0_62 = arith.constant 0 : index
    %c0_63 = arith.constant 0 : index
    %137 = vector.load %arg12[%c0_62, %c0_63] : memref<256x128xf32, #tpu.memory_space<vmem>>, vector<256x128xf32>
    %cst_64 = arith.constant dense<0.000000e+00> : vector<32x128xf32>
    %138 = tpu.matmul %136, %137, %cst_64 {dimension_numbers = #tpu.dot_dimension_numbers<[1], [0], [0], [1], [0, 0, 1, 1], [], []>} : vector<32x256xf32>, vector<256x128xf32>, vector<32x128xf32> -> vector<32x128xf32>
    %c0_65 = arith.constant 0 : index
    %c0_66 = arith.constant 0 : index
    %139 = vector.load %arg13[%c0_65, %c0_66] : memref<1x128xf32, #tpu.memory_space<vmem>>, vector<1x128xf32>
    %140 = vector.broadcast %139 : vector<1x128xf32> to vector<32x128xf32>
    %141 = arith.mulf %138, %140 : vector<32x128xf32>
    %c0_67 = arith.constant 0 : index
    %c0_68 = arith.constant 0 : index
    %142 = vector.load %arg14[%c0_67, %c0_68] : memref<1x128xf32, #tpu.memory_space<vmem>>, vector<1x128xf32>
    %143 = vector.broadcast %142 : vector<1x128xf32> to vector<32x128xf32>
    %144 = arith.addf %141, %143 : vector<32x128xf32>
    %145 = vector.shape_cast %0 : vector<2x16x128xf32> to vector<32x128xf32>
    %146 = arith.addf %144, %145 : vector<32x128xf32>
    %147 = vector.shape_cast %146 : vector<32x128xf32> to vector<2x16x128xf32>
    %c0_69 = arith.constant 0 : index
    %c0_70 = arith.constant 0 : index
    %c0_71 = arith.constant 0 : index
    %148 = vector.load %arg15[%c0_69, %c0_70, %c0_71] : memref<2x16x128xf32, #tpu.memory_space<vmem>>, vector<2x16x128xf32>
    tpu.vector_store %arg15[%c0_69, %c0_70, %c0_71], %147 {strides = array<i32>} : memref<2x16x128xf32, #tpu.memory_space<vmem>>, vector<2x16x128xf32>,
    return
  }
  func.func @transform_0(%arg0: i32) -> (i32, i32, i32) {
    %c0_i32 = arith.constant 0 : i32
    %c0_i32_0 = arith.constant 0 : i32
    %c0_i32_1 = arith.constant 0 : i32
    return %arg0, %c0_i32, %c0_i32_0 : i32, i32, i32
  }
  func.func @transform_1(%arg0: i32) -> (i32, i32) {
    %c0_i32 = arith.constant 0 : i32
    %c0_i32_0 = arith.constant 0 : i32
    %c0_i32_1 = arith.constant 0 : i32
    return %c0_i32, %c0_i32_0 : i32, i32
  }
  func.func @transform_2(%arg0: i32) -> (i32, i32) {
    %c0_i32 = arith.constant 0 : i32
    %c0_i32_0 = arith.constant 0 : i32
    %c0_i32_1 = arith.constant 0 : i32
    return %c0_i32, %c0_i32_0 : i32, i32
  }
  func.func @transform_3(%arg0: i32) -> (i32, i32) {
    %c0_i32 = arith.constant 0 : i32
    %c0_i32_0 = arith.constant 0 : i32
    %c0_i32_1 = arith.constant 0 : i32
    return %c0_i32, %c0_i32_0 : i32, i32
  }
  func.func @transform_4(%arg0: i32) -> (i32, i32) {
    %c0_i32 = arith.constant 0 : i32
    %c0_i32_0 = arith.constant 0 : i32
    %c0_i32_1 = arith.constant 0 : i32
    return %c0_i32, %c0_i32_0 : i32, i32
  }
  func.func @transform_5(%arg0: i32) -> (i32, i32) {
    %c0_i32 = arith.constant 0 : i32
    %c0_i32_0 = arith.constant 0 : i32
    %c0_i32_1 = arith.constant 0 : i32
    return %c0_i32, %c0_i32_0 : i32, i32
  }
  func.func @transform_6(%arg0: i32) -> (i32, i32) {
    %c0_i32 = arith.constant 0 : i32
    %c0_i32_0 = arith.constant 0 : i32
    %c0_i32_1 = arith.constant 0 : i32
    return %c0_i32, %c0_i32_0 : i32, i32
  }
  func.func @transform_7(%arg0: i32) -> (i32, i32) {
    %c0_i32 = arith.constant 0 : i32
    %c0_i32_0 = arith.constant 0 : i32
    %c0_i32_1 = arith.constant 0 : i32
    return %c0_i32, %c0_i32_0 : i32, i32
  }
  func.func @transform_8(%arg0: i32) -> (i32, i32) {
    %c0_i32 = arith.constant 0 : i32
    %c0_i32_0 = arith.constant 0 : i32
    %c0_i32_1 = arith.constant 0 : i32
    return %c0_i32, %c0_i32_0 : i32, i32
  }
  func.func @transform_9(%arg0: i32) -> (i32, i32) {
    %c0_i32 = arith.constant 0 : i32
    %c0_i32_0 = arith.constant 0 : i32
    %c0_i32_1 = arith.constant 0 : i32
    return %c0_i32, %c0_i32_0 : i32, i32
  }
  func.func @transform_10(%arg0: i32) -> (i32, i32) {
    %c0_i32 = arith.constant 0 : i32
    %c0_i32_0 = arith.constant 0 : i32
    %c0_i32_1 = arith.constant 0 : i32
    return %c0_i32, %c0_i32_0 : i32, i32
  }
  func.func @transform_11(%arg0: i32) -> (i32, i32) {
    %c0_i32 = arith.constant 0 : i32
    %c0_i32_0 = arith.constant 0 : i32
    %c0_i32_1 = arith.constant 0 : i32
    return %c0_i32, %c0_i32_0 : i32, i32
  }
  func.func @transform_12(%arg0: i32) -> (i32, i32) {
    %c0_i32 = arith.constant 0 : i32
    %c0_i32_0 = arith.constant 0 : i32
    %c0_i32_1 = arith.constant 0 : i32
    return %c0_i32, %c0_i32_0 : i32, i32
  }
  func.func @transform_13(%arg0: i32) -> (i32, i32) {
    %c0_i32 = arith.constant 0 : i32
    %c0_i32_0 = arith.constant 0 : i32
    %c0_i32_1 = arith.constant 0 : i32
    return %c0_i32, %c0_i32_0 : i32, i32
  }
  func.func @transform_14(%arg0: i32) -> (i32, i32, i32) {
    %c0_i32 = arith.constant 0 : i32
    %c0_i32_0 = arith.constant 0 : i32
    %c0_i32_1 = arith.constant 0 : i32
    return %arg0, %c0_i32, %c0_i32_0 : i32, i32, i32
  }
}

</mosaic_0001>

<bundles_post_ra>
// kernel: tpu_custom_call.1
= control target key start
LH: loop header
LB: loop body
LE: loop exit
PB: predicated region body
PF: predicated region fallthrough
CT: control target
= control target key end

     0   :  { %19 = vsyncpa [#allocation5], 0  ;;  %s2428_s0 = inlined_call_operand.hbm [shape: f32[2,16,128], index: 0, kind: input, shape index: {}]   ;;  %s2429_s1 = inlined_call_operand.hbm [shape: f32[384,256], index: 1, kind: input, shape index: {}]   ;;  %s2430_s2 = inlined_call_operand.vmem [shape: f32[1,256], index: 2, kind: input, shape index: {}]   ;;  %s2431_s3 = inlined_call_operand.hbm [shape: f32[1,256], index: 3, kind: input, shape index: {}]   ;;  %s2432_s4 = inlined_call_operand.hbm [shape: f32[768,256], index: 4, kind: input, shape index: {}]   ;;  %s2433_s5 = inlined_call_operand.vmem [shape: f32[1,256], index: 5, kind: input, shape index: {}]   ;;  %s2434_s6 = inlined_call_operand.vmem [shape: f32[1,256], index: 6, kind: input, shape index: {}]   ;;  %s2435_s7 = inlined_call_operand.vmem [shape: f32[2,16], index: 7, kind: input, shape index: {}]   ;;  %s2436_s8 = inlined_call_operand.hbm [shape: f32[1,2], index: 8, kind: input, shape index: {}]   ;;  %s2437_s9 = inlined_call_operand.vmem [shape: f32[2,256], index: 9, kind: input, shape index: {}]   ;;  %s2438_s10 = inlined_call_operand.vmem [shape: f32[1,256], index: 10, kind: input, shape index: {}]   ;;  %s2439_s11 = inlined_call_operand.hbm [shape: f32[256,128], index: 11, kind: input, shape index: {}]   ;;  %s2440_s12 = inlined_call_operand.vmem [shape: f32[1,128], index: 12, kind: input, shape index: {}]   ;;  %s2441_s13 = inlined_call_operand.vmem [shape: f32[1,128], index: 13, kind: input, shape index: {}]   ;;  %s2442_s14 = inlined_call_operand.hbm [shape: f32[2,16,128], index: 14, kind: output, shape index: {}]  }
   0x1   :  { %20 = vsyncpa [#allocation8], 0 }
   0x2   :  { %21 = vsyncpa [#allocation11], 0 }
   0x3   :  { %22 = vsyncpa [#allocation14], 0 }
   0x4   :  { %23 = vsyncpa [#allocation6], 0  ;;  %s2063_s29 = smov [#allocation7]  }
   0x5   :  { %s41_s30 = sshll.u32 %s2063_s29, 4  ;;  %s42_s30 = int_to_ptr.vmem [resolvable:$true] %s41_s30 }
   0x6   :  { %s1921_s15 = scalar_lea.vmem %s42_s30, 12288  ;;  %p1926_p1 = scmp.lt.s32.totalorder %s42_s30, %s42_s30 }
   0x7   :  { %p1922_p0 = scmp.ne.s32.totalorder %s42_s30, %s1921_s15  ;;  %p1927_p2 = scmp.lt.s32.totalorder %s1921_s15, %s1921_s15 }
   0x9   :  { %p1928_p3 = por %p1927_p2, %p1926_p1 }
   0xb   :  { %p1929_p4 = pnand %p1928_p3, %p1922_p0 }
   0xd   :  { %1932 = shalt.err (!%p1929_p4)
}
   0xe   :  { %s2064_s16 = smov 256   ;;  %s2065_s17 = smov 16  }
   0xf   :  { %47 = dma.hbm_to_vmem [thread:$0]  %s2429_s1, 12288, %s42_s30, [#allocation8], %s2064_s16, %s2064_s16, %s2065_s17  }
  0x10   :  { %s2066_s20 = smov [#allocation10]   ;;  %s2067_s22 = smov [#allocation4]  }
  0x11   :  { %s65_s21 = sshll.u32 %s2066_s20, 4  ;;  %s29_s23 = sshll.u32 %s2067_s22, 4  ;;  %s66_s21 = int_to_ptr.vmem [resolvable:$true] %s65_s21  ;;  %s30_s23 = int_to_ptr.vmem [resolvable:$true] %s29_s23 }
  0x12   :  { %s1941_s24 = scalar_lea.vmem %s66_s21, 24576  ;;  %p1946_p6 = scmp.lt.s32.totalorder %s66_s21, %s66_s21 }
  0x13   :  { %p1942_p5 = scmp.ne.s32.totalorder %s66_s21, %s1941_s24  ;;  %p1947_p7 = scmp.lt.s32.totalorder %s1941_s24, %s1941_s24 }
  0x15   :  { %p1948_p8 = por %p1947_p7, %p1946_p6 }
  0x17   :  { %p1949_p9 = pnand %p1948_p8, %p1942_p5 }
  0x19   :  { %1952 = shalt.err (!%p1949_p9)
}
  0x1a   :  { %71 = dma.hbm_to_vmem [thread:$0]  %s2432_s4, 24576, %s66_s21, [#allocation11], %s2064_s16, %s2064_s16, %s2065_s17  }
  0x1b   :  { %s1961_s27 = scalar_lea.vmem %s30_s23, 512  ;;  %p1966_p11 = scmp.lt.s32.totalorder %s30_s23, %s30_s23 }
  0x1c   :  { %p1962_p10 = scmp.ne.s32.totalorder %s30_s23, %s1961_s27  ;;  %p1967_p12 = scmp.lt.s32.totalorder %s1961_s27, %s1961_s27 }
  0x1e   :  { %p1968_p13 = por %p1967_p12, %p1966_p11 }
  0x20   :  { %p1969_p0 = pnand %p1968_p13, %p1962_p10 }
  0x22   :  { %1972 = shalt.err (!%p1969_p0)
}
  0x23   :  { %s2068_s1 = smov 128   ;;  %s2069_s28 = smov 8  }
  0x24   :  { %35 = dma.hbm_to_vmem [thread:$0]  %s2428_s0, 512, %s30_s23, [#allocation5], %s2068_s1, %s2068_s1, %s2069_s28  }
  0x25   :  { %s2070_s15 = smov [#allocation9]   ;;  %s2071_s4 = smov [#allocation12]  }
  0x26   :  { %s56_s18 = sshll.u32 %s2070_s15, 4  ;;  %s84_s16 = sshll.u32 %s2071_s4, 4  ;;  %s57_s18 = int_to_ptr.vmem [resolvable:$true] %s56_s18  ;;  %s85_s16 = int_to_ptr.vmem [resolvable:$true] %s84_s16 }
  0x27   :  { %s1981_s19 = scalar_lea.vmem %s57_s18, 32  ;;  %p1986_p2 = scmp.lt.s32.totalorder %s57_s18, %s57_s18 }
  0x28   :  { %p1982_p1 = scmp.ne.s32.totalorder %s57_s18, %s1981_s19  ;;  %p1987_p3 = scmp.lt.s32.totalorder %s1981_s19, %s1981_s19 }
  0x2a   :  { %p1988_p4 = por %p1987_p3, %p1986_p2 }
  0x2c   :  { %p1989_p5 = pnand %p1988_p4, %p1982_p1 }
  0x2e   :  { %1992 = shalt.err (!%p1989_p5)
}
  0x2f   :  { %59 = dma.hbm_to_vmem [thread:$0]  %s2431_s3, 32, %s57_s18, [#allocation8]  }
  0x30   :  { %s2001_s22 = scalar_lea.vmem %s85_s16, 16  ;;  %s2005_s0 = scalar_lea.vmem %s85_s16, 32 }
  0x31   :  { %p2002_p6 = scmp.ne.s32.totalorder %s85_s16, %s2001_s22  ;;  %p2006_p7 = scmp.lt.s32.totalorder %s85_s16, %s85_s16 }
  0x32   :  { %p2007_p8 = scmp.lt.s32.totalorder %s2005_s0, %s2001_s22 }
  0x34   :  { %p2008_p9 = por %p2007_p8, %p2006_p7 }
  0x36   :  { %p2009_p10 = pnand %p2008_p9, %p2002_p6 }
  0x38   :  { %2012 = shalt.err (!%p2009_p10)
}
  0x39   :  { %87 = dma.hbm_to_vmem [thread:$0]  %s2436_s8, 16, %s85_s16, [#allocation11]  }
  0x3a   :  { %s2072_s25 = smov [#allocation13]  }
  0x3b   :  { %s97_s26 = sshll.u32 %s2072_s25, 4  ;;  %s98_s26 = int_to_ptr.vmem [resolvable:$true] %s97_s26 }
  0x3c   :  { %s2021_s27 = scalar_lea.vmem %s98_s26, 4096  ;;  %p2026_p12 = scmp.lt.s32.totalorder %s98_s26, %s98_s26 }
  0x3d   :  { %p2022_p11 = scmp.ne.s32.totalorder %s98_s26, %s2021_s27  ;;  %p2027_p13 = scmp.lt.s32.totalorder %s2021_s27, %s2021_s27 }
  0x3f   :  { %p2028_p0 = por %p2027_p13, %p2026_p12 }
  0x41   :  { %p2029_p1 = pnand %p2028_p0, %p2022_p11 }
  0x43   :  { %2032 = shalt.err (!%p2029_p1)
}
  0x44   :  { %103 = dma.hbm_to_vmem [thread:$0]  %s2439_s11, 4096, %s98_s26, [#allocation14], %s2068_s1, %s2068_s1, %s2069_s28  }
  0x45   :  { %2053 = dma.done.wait [#allocation5], 512  }
  0x46   :  { %2054 = vsyncadd [#allocation5], 4294966784 }
  0x47   :  { %2055 = dma.done.wait [#allocation8], 12320  }
  0x48   :  { %2056 = vsyncadd [#allocation8], 4294954976 }
  0x49   :  { %2057 = dma.done.wait [#allocation11], 24592  }
  0x4a   :  { %2058 = vsyncadd [#allocation11], 4294942704 }
  0x4b   :  { %2059 = dma.done.wait [#allocation14], 4096  }
  0x4c   :  { %2060 = vsyncadd [#allocation14], 4294963200  ;;  %v2073_v0 = vmov 0.0   ;;  %v183_v1 = vld [vmem:[#allocation7 + $0xf8] sm:$0xff]  ;;  %v182_v2 = vld [vmem:[#allocation7 + $0xf0] sm:$0xff]  ;;  %vm542_vm0 = vcmask 1040384  }
  0x4d   :  { %401 = vmatprep.mubr.f32.mxu1 %v2073_v0  ;;  %130 = vst [vmem:[#allocation2] sm:$0xff] %v2073_v0  ;;  %131 = vst [vmem:[#allocation2 + $0x8] sm:$0xff] %v2073_v0  ;;  %v181_v3 = vld [vmem:[#allocation7 + $0xe8] sm:$0xff]  ;;  %248 = vmatprep.subr.mxu0 %v183_v1  ;;  %v180_v4 = vld [vmem:[#allocation7 + $0xe0] sm:$0xff]  ;;  %vm607_vm1 = vcmask 1046528   ;;  %vm652_vm2 = vcmask 1045504  }
  0x4e   :  { %132 = vst [vmem:[#allocation2 + $0x10] sm:$0x3] %v2073_v0  ;;  %133 = vst [vmem:[#allocation2 + $0x18] sm:$0xff] %v2073_v0  ;;  %249 = vmatpush1.msra.mxu0 %v182_v2  ;;  %v179_v5 = vld [vmem:[#allocation7 + $0xd8] sm:$0xff]  ;;  %v178_v6 = vld [vmem:[#allocation7 + $0xd0] sm:$0xff]  ;;  %s2076_s4 = smov 80  }
  0x4f   :  { %134 = vst [vmem:[#allocation2 + $0x20] sm:$0xff] %v2073_v0  ;;  %135 = vst [vmem:[#allocation2 + $0x28] sm:$0x3] %v2073_v0  ;;  %250 = vmatprep.subr.mxu0 %v181_v3  ;;  %v177_v7 = vld [vmem:[#allocation7 + $0xc8] sm:$0xff]  ;;  %v176_v8 = vld [vmem:[#allocation7 + $0xc0] sm:$0xff]  ;;  %s2077_s16 = smov 64  }
  0x50   :  { %522 = vst [vmem:[#allocation3 + $0x30] sm:$0xff] %v2073_v0  ;;  %523 = vst [vmem:[#allocation3] sm:$0xff] %v2073_v0  ;;  %251 = vmatpush1.msra.mxu0 %v180_v4  ;;  %v175_v9 = vld [vmem:[#allocation7 + $0xb8] sm:$0xff]  ;;  %v174_v10 = vld [vmem:[#allocation7 + $0xb0] sm:$0xff]  ;;  %s2078_s19 = smov 48   ;;  %s2079_s20 = smov 32  }
  0x51   :  { %526 = vst [vmem:[#allocation3 + $0x50] sm:$0x3] %v2073_v0  ;;  %527 = vst [vmem:[#allocation3 + $0x20] sm:$0x3] %v2073_v0  ;;  %252 = vmatprep.subr.mxu0 %v179_v5  ;;  %v173_v11 = vld [vmem:[#allocation7 + $0xa8] sm:$0xff]  ;;  %v172_v12 = vld [vmem:[#allocation7 + $0xa0] sm:$0xff] }
  0x52   :  { %528 = vst [vmem:[#allocation3 + $0x8] sm:$0xff] %v2073_v0  ;;  %529 = vst [vmem:[#allocation3 + $0x38] sm:$0xff] %v2073_v0  ;;  %253 = vmatpush1.msra.mxu0 %v178_v6  ;;  %v171_v13 = vld [vmem:[#allocation7 + $0x98] sm:$0xff]  ;;  %v170_v15 = vld [vmem:[#allocation7 + $0x90] sm:$0xff]  ;;  %vm1397_vm3 = vcmask 1041409   ;;  %vm1400_vm4 = vcmask 123904  }
  0x53   :  { %532 = vst [vmem:[#allocation3 + $0x10] sm:$0x3] %v2073_v0  ;;  %533 = vst [vmem:[#allocation3 + $0x40] sm:$0x3] %v2073_v0  ;;  %254 = vmatprep.subr.mxu0 %v177_v7  ;;  %v247_v14 = vld [vmem:[#allocation7 + $0x2f8] sm:$0xff]  ;;  %v246_v16 = vld [vmem:[#allocation7 + $0x2f0] sm:$0xff] }
  0x54   :  { %255 = vmatpush1.msra.mxu0 %v176_v8  ;;  %337 = vmatprep.subr.mxu1 %v247_v14  ;;  %v245_v17 = vld [vmem:[#allocation7 + $0x2e8] sm:$0xff]  ;;  %v244_v19 = vld [vmem:[#allocation7 + $0x2e0] sm:$0xff]  ;;  %v243_v21 = vld [vmem:[#allocation7 + $0x2d8] sm:$0xff] }
  0x55   :  { %256 = vmatprep.subr.mxu0 %v175_v9  ;;  %v169_v18 = vld [vmem:[#allocation7 + $0x88] sm:$0xff]  ;;  %338 = vmatpush1.msra.mxu1 %v246_v16  ;;  %v168_v20 = vld [vmem:[#allocation7 + $0x80] sm:$0xff]  ;;  %v242_v22 = vld [vmem:[#allocation7 + $0x2d0] sm:$0xff] }
  0x56   :  { %257 = vmatpush1.msra.mxu0 %v174_v10  ;;  %339 = vmatprep.subr.mxu1 %v245_v17  ;;  %v167_v23 = vld [vmem:[#allocation7 + $0x78] sm:$0xff]  ;;  %v241_v24 = vld [vmem:[#allocation7 + $0x2c8] sm:$0xff]  ;;  %v166_v25 = vld [vmem:[#allocation7 + $0x70] sm:$0xff] }
  0x57   :  { %258 = vmatprep.subr.mxu0 %v173_v11  ;;  %340 = vmatpush1.msra.mxu1 %v244_v19  ;;  %v240_v26 = vld [vmem:[#allocation7 + $0x2c0] sm:$0xff]  ;;  %v165_v27 = vld [vmem:[#allocation7 + $0x68] sm:$0xff]  ;;  %v239_v28 = vld [vmem:[#allocation7 + $0x2b8] sm:$0xff] }
  0x58   :  { %259 = vmatpush1.msra.mxu0 %v172_v12  ;;  %341 = vmatprep.subr.mxu1 %v243_v21  ;;  %v164_v29 = vld [vmem:[#allocation7 + $0x60] sm:$0xff]  ;;  %v238_v30 = vld [vmem:[#allocation7 + $0x2b0] sm:$0xff]  ;;  %v163_v31 = vld [vmem:[#allocation7 + $0x58] sm:$0xff] }
  0x59   :  { %260 = vmatprep.subr.mxu0 %v171_v13  ;;  %342 = vmatpush1.msra.mxu1 %v242_v22  ;;  %v237_v32 = vld [vmem:[#allocation7 + $0x2a8] sm:$0xff]  ;;  %v162_v33 = vld [vmem:[#allocation7 + $0x50] sm:$0xff]  ;;  %v236_v34 = vld [vmem:[#allocation7 + $0x2a0] sm:$0xff] }
  0x5a   :  { %261 = vmatpush1.msra.mxu0 %v170_v15  ;;  %343 = vmatprep.subr.mxu1 %v241_v24  ;;  %v161_v35 = vld [vmem:[#allocation7 + $0x48] sm:$0xff]  ;;  %v235_v36 = vld [vmem:[#allocation7 + $0x298] sm:$0xff]  ;;  %v160_v37 = vld [vmem:[#allocation7 + $0x40] sm:$0xff] }
  0x5b   :  { %262 = vmatprep.subr.mxu0 %v169_v18  ;;  %344 = vmatpush1.msra.mxu1 %v240_v26  ;;  %v234_v38 = vld [vmem:[#allocation7 + $0x290] sm:$0xff]  ;;  %v159_v39 = vld [vmem:[#allocation7 + $0x38] sm:$0xff]  ;;  %v233_v40 = vld [vmem:[#allocation7 + $0x288] sm:$0xff] }
  0x5c   :  { %263 = vmatpush1.msra.mxu0 %v168_v20  ;;  %345 = vmatprep.subr.mxu1 %v239_v28  ;;  %v158_v41 = vld [vmem:[#allocation7 + $0x30] sm:$0xff]  ;;  %v232_v42 = vld [vmem:[#allocation7 + $0x280] sm:$0xff]  ;;  %v157_v43 = vld [vmem:[#allocation7 + $0x28] sm:$0xff] }
  0x5d   :  { %264 = vmatprep.subr.mxu0 %v167_v23  ;;  %346 = vmatpush1.msra.mxu1 %v238_v30  ;;  %v231_v44 = vld [vmem:[#allocation7 + $0x278] sm:$0xff]  ;;  %v156_v45 = vld [vmem:[#allocation7 + $0x20] sm:$0xff]  ;;  %v230_v46 = vld [vmem:[#allocation7 + $0x270] sm:$0xff] }
  0x5e   :  { %265 = vmatpush1.msra.mxu0 %v166_v25  ;;  %347 = vmatprep.subr.mxu1 %v237_v32  ;;  %v155_v47 = vld [vmem:[#allocation7 + $0x18] sm:$0xff]  ;;  %v229_v48 = vld [vmem:[#allocation7 + $0x268] sm:$0xff]  ;;  %v154_v49 = vld [vmem:[#allocation7 + $0x10] sm:$0xff] }
  0x5f   :  { %266 = vmatprep.subr.mxu0 %v165_v27  ;;  %348 = vmatpush1.msra.mxu1 %v236_v34  ;;  %v228_v50 = vld [vmem:[#allocation7 + $0x260] sm:$0xff]  ;;  %v153_v51 = vld [vmem:[#allocation7 + $0x8] sm:$0xff]  ;;  %v227_v52 = vld [vmem:[#allocation7 + $0x258] sm:$0xff] }
  0x60   :  { %267 = vmatpush1.msra.mxu0 %v164_v29  ;;  %349 = vmatprep.subr.mxu1 %v235_v36  ;;  %v152_v53 = vld [vmem:[#allocation7] sm:$0xff]  ;;  %v226_v54 = vld [vmem:[#allocation7 + $0x250] sm:$0xff]  ;;  %v215_v55 = vld [vmem:[#allocation7 + $0x1f8] sm:$0xff] }
  0x61   :  { %268 = vmatprep.subr.mxu0 %v163_v31  ;;  %350 = vmatpush1.msra.mxu1 %v234_v38  ;;  %v214_v56 = vld [vmem:[#allocation7 + $0x1f0] sm:$0xff]  ;;  %v225_v57 = vld [vmem:[#allocation7 + $0x248] sm:$0xff]  ;;  %v224_v59 = vld [vmem:[#allocation7 + $0x240] sm:$0xff] }
  0x62   :  { %269 = vmatpush1.msra.mxu0 %v162_v33  ;;  %351 = vmatprep.subr.mxu1 %v233_v40  ;;  %v213_v58 = vld [vmem:[#allocation7 + $0x1e8] sm:$0xff]  ;;  %v126_v60 = vld [vmem:[#allocation4] sm:$0xff]  ;;  %v223_v61 = vld [vmem:[#allocation7 + $0x238] sm:$0xff] }
  0x63   :  { %270 = vmatprep.subr.mxu0 %v161_v35  ;;  %352 = vmatpush1.msra.mxu1 %v232_v42  ;;  %v2200_v62 = vld [vmem:[#allocation4 + $0x8] sm:$0xff]  ;;  %136 = vst [vmem:[#allocation2 + $0x1] sm:$0xff] %v126_v60  ;;  %v2202_v63 = vld [vmem:[#allocation4 + $0x10] sm:$0xff]  ;;  %v212_v1 = vld [vmem:[#allocation7 + $0x1e0] sm:$0xff] }
  0x64   :  { %271 = vmatpush1.msra.mxu0 %v160_v37  ;;  %353 = vmatprep.subr.mxu1 %v231_v44  ;;  %v222_v2 = vld [vmem:[#allocation7 + $0x230] sm:$0xff]  ;;  %137 = vst [vmem:[#allocation2 + $0x9] sm:$0xff] %v2200_v62  ;;  %138 = vst [vmem:[#allocation2 + $0x19] sm:$0xff] %v2202_v63  ;;  %v2206_v3 = vld [vmem:[#allocation4 + $0x18] sm:$0xff] }
  0x65   :  { %272 = vmatprep.subr.mxu0 %v159_v39  ;;  %354 = vmatpush1.msra.mxu1 %v230_v46  ;;  %v211_v4 = vld [vmem:[#allocation7 + $0x1d8] sm:$0xff]  ;;  %v221_v5 = vld [vmem:[#allocation7 + $0x228] sm:$0xff]  ;;  %139 = vst [vmem:[#allocation2 + $0x21] sm:$0xff] %v2206_v3  ;;  %v210_v6 = vld [vmem:[#allocation7 + $0x1d0] sm:$0xff] }
  0x66   :  { %273 = vmatpush1.msra.mxu0 %v158_v41  ;;  %355 = vmatprep.subr.mxu1 %v229_v48  ;;  %v220_v7 = vld [vmem:[#allocation7 + $0x220] sm:$0xff]  ;;  %v209_v8 = vld [vmem:[#allocation7 + $0x1c8] sm:$0xff]  ;;  %v219_v9 = vld [vmem:[#allocation7 + $0x218] sm:$0xff] }
  0x67   :  { %274 = vmatprep.subr.mxu0 %v157_v43  ;;  %356 = vmatpush1.msra.mxu1 %v228_v50  ;;  %v208_v10 = vld [vmem:[#allocation7 + $0x1c0] sm:$0xff]  ;;  %v218_v11 = vld [vmem:[#allocation7 + $0x210] sm:$0xff]  ;;  %v207_v12 = vld [vmem:[#allocation7 + $0x1b8] sm:$0xff] }
  0x68   :  { %275 = vmatpush1.msra.mxu0 %v156_v45  ;;  %357 = vmatprep.subr.mxu1 %v227_v52  ;;  %v217_v13 = vld [vmem:[#allocation7 + $0x208] sm:$0xff]  ;;  %v206_v14 = vld [vmem:[#allocation7 + $0x1b0] sm:$0xff]  ;;  %v216_v15 = vld [vmem:[#allocation7 + $0x200] sm:$0xff] }
  0x69   :  { %276 = vmatprep.subr.mxu0 %v155_v47  ;;  %358 = vmatpush1.msra.mxu1 %v226_v54  ;;  %v205_v16 = vld [vmem:[#allocation7 + $0x1a8] sm:$0xff]  ;;  %v204_v18 = vld [vmem:[#allocation7 + $0x1a0] sm:$0xff]  ;;  %v203_v19 = vld [vmem:[#allocation7 + $0x198] sm:$0xff] }
  0x6a   :  { %277 = vmatpush1.msra.mxu0 %v154_v49  ;;  %359 = vmatprep.subr.mxu1 %v225_v57  ;;  %v202_v20 = vld [vmem:[#allocation7 + $0x190] sm:$0xff]  ;;  %v712_v21 = vld [vmem:[#allocation10 + $0xf8] sm:$0xff]  ;;  %v201_v22 = vld [vmem:[#allocation7 + $0x188] sm:$0xff] }
  0x6b   :  { %278 = vmatprep.subr.mxu0 %v153_v51  ;;  %360 = vmatpush1.msra.mxu1 %v224_v59  ;;  %v148_v17 = vld [vmem:[#allocation2 + $0x2] sm:$0xff]  ;;  %v149_v23 = vld [vmem:[#allocation2 + $0xa] sm:$0xff]  ;;  %v710_v28 = vld [vmem:[#allocation10 + $0xe8] sm:$0xff] }
  0x6c   :  { %279 = vmatpush1.msra.mxu0 %v152_v53  ;;  %361 = vmatprep.subr.mxu1 %v223_v61  ;;  %v200_v24 = vld [vmem:[#allocation7 + $0x180] sm:$0xff]  ;;  %v199_v25 = vld [vmem:[#allocation7 + $0x178] sm:$0xff]  ;;  %v198_v27 = vld [vmem:[#allocation7 + $0x170] sm:$0xff] }
  0x6d   :  { %280 = vmatprep.subr.mxu0 %v215_v55  ;;  %362 = vmatpush1.msra.mxu1 %v222_v2  ;;  %v711_v26 = vld [vmem:[#allocation10 + $0xf0] sm:$0xff]  ;;  %v197_v29 = vld [vmem:[#allocation7 + $0x168] sm:$0xff]  ;;  %v196_v31 = vld [vmem:[#allocation7 + $0x160] sm:$0xff] }
  0x6e   :  { %281 = vmatpush2.msra.mxu0 %v214_v56  ;;  %363 = vmatprep.subr.mxu1 %v221_v5  ;;  %v150_v30 = vld [vmem:[#allocation2 + $0x1a] sm:$0xff]  ;;  %v195_v32 = vld [vmem:[#allocation7 + $0x158] sm:$0xff]  ;;  %v709_v33 = vld [vmem:[#allocation10 + $0xe0] sm:$0xff] }
  0x6f   :  { %282 = vmatprep.subr.mxu0 %v213_v58  ;;  %364 = vmatpush1.msra.mxu1 %v220_v7  ;;  %v194_v34 = vld [vmem:[#allocation7 + $0x150] sm:$0xff]  ;;  %v708_v35 = vld [vmem:[#allocation10 + $0xd8] sm:$0xff]  ;;  %v193_v36 = vld [vmem:[#allocation7 + $0x148] sm:$0xff] }
  0x70   :  { %283 = vmatpush2.msra.mxu0 %v212_v1  ;;  %365 = vmatprep.subr.mxu1 %v219_v9  ;;  %v151_v37 = vld [vmem:[#allocation2 + $0x22] sm:$0xff]  ;;  %v192_v38 = vld [vmem:[#allocation7 + $0x140] sm:$0xff]  ;;  %v706_v41 = vld [vmem:[#allocation10 + $0xc8] sm:$0xff] }
  0x71   :  { %284 = vmatprep.subr.mxu0 %v211_v4  ;;  %366 = vmatpush1.msra.mxu1 %v218_v11  ;;  %v707_v39 = vld [vmem:[#allocation10 + $0xd0] sm:$0xff]  ;;  %v705_v43 = vld [vmem:[#allocation10 + $0xc0] sm:$0xff]  ;;  %v704_v45 = vld [vmem:[#allocation10 + $0xb8] sm:$0xff] }
  0x72   :  { %285 = vmatpush2.msra.mxu0 %v210_v6  ;;  %367 = vmatprep.subr.mxu1 %v217_v13  ;;  %v191_v40 = vld [vmem:[#allocation7 + $0x138] sm:$0xff]  ;;  %v190_v42 = vld [vmem:[#allocation7 + $0x130] sm:$0xff]  ;;  %v189_v44 = vld [vmem:[#allocation7 + $0x128] sm:$0xff] }
  0x73   :  { %286 = vmatprep.subr.mxu0 %v209_v8  ;;  %368 = vmatpush1.msra.mxu1 %v216_v15  ;;  %v188_v46 = vld [vmem:[#allocation7 + $0x120] sm:$0xff]  ;;  %v186_v47 = vld [vmem:[#allocation7 + $0x110] sm:$0xff]  ;;  %v185_v48 = vld [vmem:[#allocation7 + $0x108] sm:$0xff] }
  0x74   :  { %287 = vmatpush2.msra.mxu0 %v208_v10  ;;  %402 = vmatmul.mubr.f32.vlgmr.msra.gmra.mxu1 %v148_v17  ;;  %v184_v49 = vld [vmem:[#allocation7 + $0x100] sm:$0xff]  ;;  %v140_v50 = vld [vmem:[#allocation2] sm:$0xff]  ;;  %v141_v51 = vld [vmem:[#allocation2 + $0x8] sm:$0xff] }
  0x75   :  { %288 = vmatprep.subr.mxu0 %v207_v12  ;;  %312 = vmatprep.mubr.f32.mxu0 %v126_v60  ;;  %v142_v52 = vld [vmem:[#allocation2 + $0x18] sm:$0xff]  ;;  %v143_v53 = vld [vmem:[#allocation2 + $0x20] sm:$0xff]  ;;  %v776_v55 = vld [vmem:[#allocation10 + $0x2f8] sm:$0xff] }
  0x76   :  { %289 = vmatpush2.msra.mxu0 %v206_v14  ;;  %407 = vmatprep.mubr.f32.mxu1 %v2073_v0  ;;  %v703_v54 = vld [vmem:[#allocation10 + $0xb0] sm:$0xff]  ;;  %v702_v56 = vld [vmem:[#allocation10 + $0xa8] sm:$0xff]  ;;  %v773_v59 = vld [vmem:[#allocation10 + $0x2e0] sm:$0xff] }
  0x77   :  { %290 = vmatprep.subr.mxu0 %v205_v16  ;;  %873 = vmatprep.subr.mxu1 %v712_v21  ;;  %v775_v57 = vld [vmem:[#allocation10 + $0x2f0] sm:$0xff]  ;;  %v774_v58 = vld [vmem:[#allocation10 + $0x2e8] sm:$0xff]  ;;  %v772_v60 = vld [vmem:[#allocation10 + $0x2d8] sm:$0xff] }
  0x78   :  { %291 = vmatpush2.msra.mxu0 %v204_v18  ;;  %408 = vmatmul.mubr.f32.gmra.mxu1 %v149_v23  ;;  %v771_v61 = vld [vmem:[#allocation10 + $0x2d0] sm:$0xff]  ;;  %v769_v1 = vld [vmem:[#allocation10 + $0x2c0] sm:$0xff]  ;;  %v700_v2 = vld [vmem:[#allocation10 + $0x98] sm:$0xff] }
  0x79   :  { %292 = vmatprep.subr.mxu0 %v203_v19  ;;  %413 = vmatprep.mubr.f32.mxu1 %v2073_v0  ;;  %v699_v4 = vld [vmem:[#allocation10 + $0x90] sm:$0xff]  ;;  %v698_v6 = vld [vmem:[#allocation10 + $0x88] sm:$0xff]  ;;  %v697_v8 = vld [vmem:[#allocation10 + $0x80] sm:$0xff] }
  0x7a   :  { %293 = vmatpush2.msra.mxu0 %v202_v20  ;;  %874 = vmatpush1.msra.mxu1 %v711_v26  ;;  %v767_v5 = vld [vmem:[#allocation10 + $0x2b0] sm:$0xff]  ;;  %v766_v7 = vld [vmem:[#allocation10 + $0x2a8] sm:$0xff]  ;;  %v765_v9 = vld [vmem:[#allocation10 + $0x2a0] sm:$0xff] }
  0x7b   :  { %294 = vmatprep.subr.mxu0 %v201_v22  ;;  %875 = vmatprep.subr.mxu1 %v710_v28  ;;  %v696_v10 = vld [vmem:[#allocation10 + $0x78] sm:$0xff]  ;;  %v695_v12 = vld [vmem:[#allocation10 + $0x70] sm:$0xff]  ;;  %v694_v14 = vld [vmem:[#allocation10 + $0x68] sm:$0xff] }
  0x7c   :  { %295 = vmatpush2.msra.mxu0 %v200_v24  ;;  %414 = vmatmul.mubr.f32.gmra.mxu1 %v150_v30  ;;  %v764_v11 = vld [vmem:[#allocation10 + $0x298] sm:$0xff]  ;;  %v763_v13 = vld [vmem:[#allocation10 + $0x290] sm:$0xff]  ;;  %v762_v15 = vld [vmem:[#allocation10 + $0x288] sm:$0xff] }
  0x7d   :  { %296 = vmatprep.subr.mxu0 %v199_v25  ;;  %419 = vmatprep.mubr.f32.mxu1 %v2073_v0  ;;  %v187_v0 = vld [vmem:[#allocation7 + $0x118] sm:$0xff]  ;;  %v693_v16 = vld [vmem:[#allocation10 + $0x60] sm:$0xff]  ;;  %v690_v22 = vld [vmem:[#allocation10 + $0x48] sm:$0xff] }
  0x7e   :  { %297 = vmatpush2.msra.mxu0 %v198_v27  ;;  %876 = vmatpush1.msra.mxu1 %v709_v33  ;;  %v761_v17 = vld [vmem:[#allocation10 + $0x280] sm:$0xff]  ;;  %v692_v18 = vld [vmem:[#allocation10 + $0x58] sm:$0xff]  ;;  %v691_v20 = vld [vmem:[#allocation10 + $0x50] sm:$0xff] }
  0x7f   :  { %298 = vmatprep.subr.mxu0 %v197_v29  ;;  %877 = vmatprep.subr.mxu1 %v708_v35  ;;  %v760_v19 = vld [vmem:[#allocation10 + $0x278] sm:$0xff]  ;;  %v759_v21 = vld [vmem:[#allocation10 + $0x270] sm:$0xff]  ;;  %v758_v23 = vld [vmem:[#allocation10 + $0x268] sm:$0xff] }
  0x80   :  { %299 = vmatpush2.msra.mxu0 %v196_v31  ;;  %420 = vmatmul.mubr.f32.gmra.mxu1 %v151_v37  ;;  %v689_v24 = vld [vmem:[#allocation10 + $0x40] sm:$0xff]  ;;  %v688_v26 = vld [vmem:[#allocation10 + $0x38] sm:$0xff]  ;;  %v687_v28 = vld [vmem:[#allocation10 + $0x30] sm:$0xff] }
  0x81   :  { %300 = vmatprep.subr.mxu0 %v195_v32  ;;  %878 = vmatpush1.msra.mxu1 %v707_v39  ;;  %v757_v25 = vld [vmem:[#allocation10 + $0x260] sm:$0xff]  ;;  %v756_v27 = vld [vmem:[#allocation10 + $0x258] sm:$0xff]  ;;  %v755_v29 = vld [vmem:[#allocation10 + $0x250] sm:$0xff] }
  0x82   :  { %301 = vmatpush2.msra.mxu0 %v194_v34  ;;  %879 = vmatprep.subr.mxu1 %v706_v41  ;;  %v686_v30 = vld [vmem:[#allocation10 + $0x28] sm:$0xff]  ;;  %v685_v32 = vld [vmem:[#allocation10 + $0x20] sm:$0xff]  ;;  %v684_v34 = vld [vmem:[#allocation10 + $0x18] sm:$0xff] }
  0x83   :  { %302 = vmatprep.subr.mxu0 %v193_v36  ;;  %880 = vmatpush1.msra.mxu1 %v705_v43  ;;  %v754_v31 = vld [vmem:[#allocation10 + $0x248] sm:$0xff]  ;;  %v753_v33 = vld [vmem:[#allocation10 + $0x240] sm:$0xff]  ;;  %v752_v35 = vld [vmem:[#allocation10 + $0x238] sm:$0xff] }
  0x84   :  { %303 = vmatpush2.msra.mxu0 %v192_v38  ;;  %881 = vmatprep.subr.mxu1 %v704_v45  ;;  %v683_v36 = vld [vmem:[#allocation10 + $0x10] sm:$0xff]  ;;  %v682_v38 = vld [vmem:[#allocation10 + $0x8] sm:$0xff]  ;;  %v749_v41 = vld [vmem:[#allocation10 + $0x220] sm:$0xff] }
  0x85   :  { %304 = vmatprep.subr.mxu0 %v191_v40  ;;  %882 = vmatpush1.msra.mxu1 %v703_v54  ;;  %v751_v37 = vld [vmem:[#allocation10 + $0x230] sm:$0xff]  ;;  %v750_v39 = vld [vmem:[#allocation10 + $0x228] sm:$0xff]  ;;  %v681_v40 = vld [vmem:[#allocation10] sm:$0xff] }
  0x86   :  { %305 = vmatpush2.msra.mxu0 %v190_v42  ;;  %883 = vmatprep.subr.mxu1 %v702_v56  ;;  %v744_v42 = vld [vmem:[#allocation10 + $0x1f8] sm:$0xff]  ;;  %v747_v45 = vld [vmem:[#allocation10 + $0x210] sm:$0xff]  ;;  %v806_v54 = vld [vmem:[#allocation10 + $0x3e8] sm:$0xff] }
  0x87   :  { %306 = vmatprep.subr.mxu0 %v189_v44  ;;  %v748_v43 = vld [vmem:[#allocation10 + $0x218] sm:$0xff]  ;;  %v743_v44 = vld [vmem:[#allocation10 + $0x1f0] sm:$0xff]  ;;  %v805_v56 = vld [vmem:[#allocation10 + $0x3e0] sm:$0xff] }
  0x88   :  { %307 = vmatpush2.msra.mxu0 %v188_v46  ;;  %v742_v46 = vld [vmem:[#allocation10 + $0x1e8] sm:$0xff] }
  0x89   :  { %308 = vmatprep.subr.mxu0 %v187_v0  ;;  %v746_v0 = vld [vmem:[#allocation10 + $0x208] sm:$0xff] }
  0x8a   :  { %309 = vmatpush2.msra.mxu0 %v186_v47  ;;  %v741_v47 = vld [vmem:[#allocation10 + $0x1e0] sm:$0xff] }
  0x8b   :  { %310 = vmatprep.subr.mxu0 %v185_v48  ;;  %v745_v48 = vld [vmem:[#allocation10 + $0x200] sm:$0xff] }
  0x8c   :  { %311 = vmatpush2.msra.mxu0 %v184_v49  ;;  %v740_v49 = vld [vmem:[#allocation10 + $0x1d8] sm:$0xff] }
  0x8d   :  { %313 = vmatmul.mubr.f32.vlgmr.msra.gmra.mxu0 %v140_v50  ;;  %962 = vmatprep.subr.mxu0 %v776_v55  ;;  %v808_v50 = vld [vmem:[#allocation10 + $0x3f8] sm:$0xff]  ;;  %v737_v55 = vld [vmem:[#allocation10 + $0x1c0] sm:$0xff] }
  0x8e   :  { %318 = vmatprep.mubr.f32.mxu0 %v2200_v62  ;;  %963 = vmatpush1.msra.mxu0 %v775_v57  ;;  %v770_v62 = vld [vmem:[#allocation10 + $0x2c8] sm:$0xff]  ;;  %v736_v57 = vld [vmem:[#allocation10 + $0x1b8] sm:$0xff] }
  0x8f   :  { %964 = vmatprep.subr.mxu0 %v774_v58  ;;  %v804_v58 = vld [vmem:[#allocation10 + $0x3d8] sm:$0xff] }
  0x90   :  { %965 = vmatpush1.msra.mxu0 %v773_v59  ;;  %v735_v59 = vld [vmem:[#allocation10 + $0x1b0] sm:$0xff] }
  0x91   :  { %319 = vmatmul.mubr.f32.gmra.mxu0 %v141_v51  ;;  %966 = vmatprep.subr.mxu0 %v772_v60  ;;  %v739_v51 = vld [vmem:[#allocation10 + $0x1d0] sm:$0xff] }
  0x92   :  { %324 = vmatprep.mubr.f32.mxu0 %v2202_v63  ;;  %967 = vmatpush1.msra.mxu0 %v771_v61  ;;  %v701_v63 = vld [vmem:[#allocation10 + $0xa0] sm:$0xff]  ;;  %v803_v60 = vld [vmem:[#allocation10 + $0x3d0] sm:$0xff]  ;;  %v734_v61 = vld [vmem:[#allocation10 + $0x1a8] sm:$0xff] }
  0x93   :  { %968 = vmatprep.subr.mxu0 %v770_v62  ;;  %884 = vmatpush1.msra.mxu1 %v701_v63  ;;  %v802_v62 = vld [vmem:[#allocation10 + $0x3c8] sm:$0xff]  ;;  %v733_v63 = vld [vmem:[#allocation10 + $0x1a0] sm:$0xff] }
  0x94   :  { %969 = vmatpush1.msra.mxu0 %v769_v1  ;;  %885 = vmatprep.subr.mxu1 %v700_v2  ;;  %v801_v1 = vld [vmem:[#allocation10 + $0x3c0] sm:$0xff]  ;;  %v732_v2 = vld [vmem:[#allocation10 + $0x198] sm:$0xff] }
  0x95   :  { %325 = vmatmul.mubr.f32.gmra.mxu0 %v142_v52  ;;  %886 = vmatpush1.msra.mxu1 %v699_v4  ;;  %v807_v52 = vld [vmem:[#allocation10 + $0x3f0] sm:$0xff] }
  0x96   :  { %330 = vmatprep.mubr.f32.mxu0 %v2206_v3  ;;  %v768_v3 = vld [vmem:[#allocation10 + $0x2b8] sm:$0xff]  ;;  %887 = vmatprep.subr.mxu1 %v698_v6  ;;  %v731_v4 = vld [vmem:[#allocation10 + $0x190] sm:$0xff]  ;;  %v730_v6 = vld [vmem:[#allocation10 + $0x188] sm:$0xff] }
  0x97   :  { %970 = vmatprep.subr.mxu0 %v768_v3  ;;  %888 = vmatpush1.msra.mxu1 %v697_v8  ;;  %v800_v3 = vld [vmem:[#allocation10 + $0x3b8] sm:$0xff]  ;;  %v729_v8 = vld [vmem:[#allocation10 + $0x180] sm:$0xff] }
  0x98   :  { %971 = vmatpush1.msra.mxu0 %v767_v5  ;;  %889 = vmatprep.subr.mxu1 %v696_v10  ;;  %v799_v5 = vld [vmem:[#allocation10 + $0x3b0] sm:$0xff]  ;;  %v728_v10 = vld [vmem:[#allocation10 + $0x178] sm:$0xff] }
  0x99   :  { %331 = vmatmul.mubr.f32.gmra.mxu0 %v143_v53  ;;  %972 = vmatprep.subr.mxu0 %v766_v7  ;;  %v738_v53 = vld [vmem:[#allocation10 + $0x1c8] sm:$0xff] }
  0x9a   :  { %973 = vmatpush1.msra.mxu0 %v765_v9  ;;  %890 = vmatpush1.msra.mxu1 %v695_v12  ;;  %v798_v7 = vld [vmem:[#allocation10 + $0x3a8] sm:$0xff]  ;;  %v797_v9 = vld [vmem:[#allocation10 + $0x3a0] sm:$0xff]  ;;  %v727_v12 = vld [vmem:[#allocation10 + $0x170] sm:$0xff] }
  0x9b   :  { %974 = vmatprep.subr.mxu0 %v764_v11  ;;  %891 = vmatprep.subr.mxu1 %v694_v14  ;;  %v796_v11 = vld [vmem:[#allocation10 + $0x398] sm:$0xff]  ;;  %v726_v14 = vld [vmem:[#allocation10 + $0x168] sm:$0xff] }
  0x9c   :  { %975 = vmatpush1.msra.mxu0 %v763_v13  ;;  %892 = vmatpush1.msra.mxu1 %v693_v16  ;;  %v795_v13 = vld [vmem:[#allocation10 + $0x390] sm:$0xff]  ;;  %v725_v16 = vld [vmem:[#allocation10 + $0x160] sm:$0xff] }
  0x9d   :  { %976 = vmatprep.subr.mxu0 %v762_v15  ;;  %893 = vmatprep.subr.mxu1 %v692_v18  ;;  %v794_v15 = vld [vmem:[#allocation10 + $0x388] sm:$0xff]  ;;  %v724_v18 = vld [vmem:[#allocation10 + $0x158] sm:$0xff] }
  0x9e   :  { %977 = vmatpush1.msra.mxu0 %v761_v17  ;;  %894 = vmatpush1.msra.mxu1 %v691_v20  ;;  %v793_v17 = vld [vmem:[#allocation10 + $0x380] sm:$0xff]  ;;  %v723_v20 = vld [vmem:[#allocation10 + $0x150] sm:$0xff] }
  0x9f   :  { %978 = vmatprep.subr.mxu0 %v760_v19  ;;  %895 = vmatprep.subr.mxu1 %v690_v22  ;;  %v792_v19 = vld [vmem:[#allocation10 + $0x378] sm:$0xff]  ;;  %v722_v22 = vld [vmem:[#allocation10 + $0x148] sm:$0xff] }
  0xa0   :  { %979 = vmatpush1.msra.mxu0 %v759_v21  ;;  %896 = vmatpush1.msra.mxu1 %v689_v24  ;;  %v791_v21 = vld [vmem:[#allocation10 + $0x370] sm:$0xff]  ;;  %v721_v24 = vld [vmem:[#allocation10 + $0x140] sm:$0xff] }
  0xa1   :  { %980 = vmatprep.subr.mxu0 %v758_v23  ;;  %897 = vmatprep.subr.mxu1 %v688_v26  ;;  %v790_v23 = vld [vmem:[#allocation10 + $0x368] sm:$0xff]  ;;  %v720_v26 = vld [vmem:[#allocation10 + $0x138] sm:$0xff] }
  0xa2   :  { %981 = vmatpush1.msra.mxu0 %v757_v25  ;;  %898 = vmatpush1.msra.mxu1 %v687_v28  ;;  %v789_v25 = vld [vmem:[#allocation10 + $0x360] sm:$0xff]  ;;  %v719_v28 = vld [vmem:[#allocation10 + $0x130] sm:$0xff] }
  0xa3   :  { %982 = vmatprep.subr.mxu0 %v756_v27  ;;  %899 = vmatprep.subr.mxu1 %v686_v30  ;;  %v788_v27 = vld [vmem:[#allocation10 + $0x358] sm:$0xff]  ;;  %v718_v30 = vld [vmem:[#allocation10 + $0x128] sm:$0xff] }
  0xa4   :  { %983 = vmatpush1.msra.mxu0 %v755_v29  ;;  %900 = vmatpush1.msra.mxu1 %v685_v32  ;;  %v787_v29 = vld [vmem:[#allocation10 + $0x350] sm:$0xff]  ;;  %v717_v32 = vld [vmem:[#allocation10 + $0x120] sm:$0xff] }
  0xa5   :  { %984 = vmatprep.subr.mxu0 %v754_v31  ;;  %901 = vmatprep.subr.mxu1 %v684_v34  ;;  %v786_v31 = vld [vmem:[#allocation10 + $0x348] sm:$0xff]  ;;  %v716_v34 = vld [vmem:[#allocation10 + $0x118] sm:$0xff] }
  0xa6   :  { %985 = vmatpush1.msra.mxu0 %v753_v33  ;;  %902 = vmatpush1.msra.mxu1 %v683_v36  ;;  %v785_v33 = vld [vmem:[#allocation10 + $0x340] sm:$0xff]  ;;  %v715_v36 = vld [vmem:[#allocation10 + $0x110] sm:$0xff] }
  0xa7   :  { %986 = vmatprep.subr.mxu0 %v752_v35  ;;  %903 = vmatprep.subr.mxu1 %v682_v38  ;;  %v784_v35 = vld [vmem:[#allocation10 + $0x338] sm:$0xff]  ;;  %v783_v38 = vld [vmem:[#allocation10 + $0x330] sm:$0xff] }
  0xa8   :  { %987 = vmatpush1.msra.mxu0 %v751_v37  ;;  %904 = vmatpush1.msra.mxu1 %v681_v40  ;;  %v714_v37 = vld [vmem:[#allocation10 + $0x108] sm:$0xff] }
  0xa9   :  { %988 = vmatprep.subr.mxu0 %v750_v39  ;;  %905 = vmatprep.subr.mxu1 %v744_v42  ;;  %v713_v39 = vld [vmem:[#allocation10 + $0x100] sm:$0xff]  ;;  %v782_v40 = vld [vmem:[#allocation10 + $0x328] sm:$0xff] }
  0xaa   :  { %989 = vmatpush1.msra.mxu0 %v749_v41  ;;  %906 = vmatpush2.msra.mxu1 %v743_v44  ;;  %v840_v41 = vld [vmem:[#allocation10 + $0x4f8] sm:$0xff]  ;;  %v781_v42 = vld [vmem:[#allocation10 + $0x320] sm:$0xff]  ;;  %v779_v44 = vld [vmem:[#allocation10 + $0x310] sm:$0xff] }
  0xab   :  { %990 = vmatprep.subr.mxu0 %v748_v43  ;;  %907 = vmatprep.subr.mxu1 %v742_v46  ;;  %v780_v43 = vld [vmem:[#allocation10 + $0x318] sm:$0xff]  ;;  %v777_v46 = vld [vmem:[#allocation10 + $0x300] sm:$0xff] }
  0xac   :  { %991 = vmatpush1.msra.mxu0 %v747_v45  ;;  %908 = vmatpush2.msra.mxu1 %v741_v47  ;;  %v778_v45 = vld [vmem:[#allocation10 + $0x308] sm:$0xff]  ;;  %v428_v47 = vlaneseq }
  0xad   :  { %992 = vmatprep.subr.mxu0 %v746_v0  ;;  %909 = vmatprep.subr.mxu1 %v740_v49 }
  0xae   :  { %993 = vmatpush1.msra.mxu0 %v745_v48  ;;  %910 = vmatpush2.msra.mxu1 %v739_v51  ;;  %v2215_v49 = vshrl.u32 %v428_v47, 7 }
  0xaf   :  { %994 = vmatprep.subr.mxu0 %v808_v50  ;;  %911 = vmatprep.subr.mxu1 %v738_v53 }
  0xb0   :  { %995 = vmatpush2.msra.mxu0 %v807_v52  ;;  %912 = vmatpush2.msra.mxu1 %v737_v55  ;;  %v2218_v51 = vsub.s32 0, %v2215_v49  ;;  %v426_v52 = vld [vmem:[%s2430_s2] sm:$0x3]  ;;  %v446_v55 = vld [vmem:[#allocation9] sm:$0x3] }
  0xb1   :  { %996 = vmatprep.subr.mxu0 %v806_v54  ;;  %913 = vmatprep.subr.mxu1 %v736_v57  ;;  %v2224_v54 = vsub.s32 1, %v2215_v49 }
  0xb2   :  { %997 = vmatpush2.msra.mxu0 %v805_v56  ;;  %914 = vmatpush2.msra.mxu1 %v735_v59  ;;  %v431_v56 = vrot.slane %v426_v52, %v2218_v51 }
  0xb3   :  { %998 = vmatprep.subr.mxu0 %v804_v58  ;;  %915 = vmatprep.subr.mxu1 %v734_v61  ;;  %v435_v61 = vrot.slane %v426_v52, %v2224_v54 }
  0xb4   :  { %999 = vmatpush2.msra.mxu0 %v803_v60  ;;  %916 = vmatpush2.msra.mxu1 %v733_v63  ;;  %v451_v60 = vrot.slane %v446_v55, %v2218_v51 }
  0xb5   :  { %1000 = vmatprep.subr.mxu0 %v802_v62  ;;  %917 = vmatprep.subr.mxu1 %v732_v2  ;;  %v455_v2 = vrot.slane %v446_v55, %v2224_v54 }
  0xb6   :  { %1001 = vmatpush2.msra.mxu0 %v801_v1  ;;  %918 = vmatpush2.msra.mxu1 %v731_v4 }
  0xb7   :  { %1002 = vmatprep.subr.mxu0 %v800_v3  ;;  %919 = vmatprep.subr.mxu1 %v730_v6 }
  0xb8   :  { %1003 = vmatpush2.msra.mxu0 %v799_v5  ;;  %920 = vmatpush2.msra.mxu1 %v729_v8 }
  0xb9   :  { %1004 = vmatprep.subr.mxu0 %v798_v7  ;;  %921 = vmatprep.subr.mxu1 %v728_v10 }
  0xba   :  { %1005 = vmatpush2.msra.mxu0 %v797_v9  ;;  %922 = vmatpush2.msra.mxu1 %v727_v12 }
  0xbb   :  { %1006 = vmatprep.subr.mxu0 %v796_v11  ;;  %923 = vmatprep.subr.mxu1 %v726_v14 }
  0xbc   :  { %1007 = vmatpush2.msra.mxu0 %v795_v13  ;;  %924 = vmatpush2.msra.mxu1 %v725_v16 }
  0xbd   :  { %1008 = vmatprep.subr.mxu0 %v794_v15  ;;  %925 = vmatprep.subr.mxu1 %v724_v18 }
  0xbe   :  { %1009 = vmatpush2.msra.mxu0 %v793_v17  ;;  %926 = vmatpush2.msra.mxu1 %v723_v20 }
  0xbf   :  { %1010 = vmatprep.subr.mxu0 %v792_v19  ;;  %927 = vmatprep.subr.mxu1 %v722_v22 }
  0xc0   :  { %1011 = vmatpush2.msra.mxu0 %v791_v21  ;;  %928 = vmatpush2.msra.mxu1 %v721_v24 }
  0xc1   :  { %1012 = vmatprep.subr.mxu0 %v790_v23  ;;  %929 = vmatprep.subr.mxu1 %v720_v26 }
  0xc2   :  { %1013 = vmatpush2.msra.mxu0 %v789_v25  ;;  %930 = vmatpush2.msra.mxu1 %v719_v28 }
  0xc3   :  { %1014 = vmatprep.subr.mxu0 %v788_v27  ;;  %931 = vmatprep.subr.mxu1 %v718_v30 }
  0xc4   :  { %1015 = vmatpush2.msra.mxu0 %v787_v29  ;;  %932 = vmatpush2.msra.mxu1 %v717_v32 }
  0xc5   :  { %1016 = vmatprep.subr.mxu0 %v786_v31  ;;  %933 = vmatprep.subr.mxu1 %v716_v34 }
  0xc6   :  { %1017 = vmatpush2.msra.mxu0 %v785_v33  ;;  %934 = vmatpush2.msra.mxu1 %v715_v36 }
  0xc7   :  { %1018 = vmatprep.subr.mxu0 %v784_v35  ;;  %935 = vmatprep.subr.mxu1 %v714_v37 }
  0xc8   :  { %1019 = vmatpush2.msra.mxu0 %v783_v38  ;;  %936 = vmatpush2.msra.mxu1 %v713_v39 }
  0xc9   :  { %1020 = vmatprep.subr.mxu0 %v782_v40  ;;  %1051 = vmatprep.subr.mxu1 %v840_v41 }
  0xca   :  { %1021 = vmatpush2.msra.mxu0 %v781_v42 }
  0xcb   :  { %1022 = vmatprep.subr.mxu0 %v780_v43 }
  0xcc   :  { %1023 = vmatpush2.msra.mxu0 %v779_v44 }
  0xcd   :  { %1024 = vmatprep.subr.mxu0 %v778_v45 }
  0xce   :  { %1025 = vmatpush2.msra.mxu0 %v777_v46 }
 0x134   :  { %v403_v0 = vpop.f32.mrf.mxu1 }
 0x136   :  { %v405_v48 = vpop.f32.mrf.mxu1 }
 0x138   :  { %v409_v50 = vpop.f32.mrf.mxu1 }
 0x13a   :  { %v411_v53 = vpop.f32.mrf.mxu1 }
 0x13c   :  { %v415_v58 = vpop.f32.mrf.mxu1 }
 0x13e   :  { %v417_v4 = vpop.f32.mrf.mxu1 }
 0x140   :  { %v421_v14 = vpop.f32.mrf.mxu1 }
 0x142   :  { %v423_v25 = vpop.f32.mrf.mxu1 }
 0x14d   :  { %v314_v57 = vpop.f32.mrf.mxu0 }
 0x14e   :  { %v404_v59 = vadd.f32 %v403_v0, %v314_v57 }
 0x14f   :  { %v316_v62 = vpop.f32.mrf.mxu0 }
 0x150   :  { %v438_v63 = vmul.f32 %v431_v56, %v404_v59  ;;  %v406_v1 = vadd.f32 %v405_v48, %v316_v62 }
 0x151   :  { %v320_v3 = vpop.f32.mrf.mxu0 }
 0x152   :  { %v2230_v5 = vadd.f32 %v451_v60, %v438_v63  ;;  %v439_v6 = vmul.f32 %v435_v61, %v406_v1  ;;  %v410_v7 = vadd.f32 %v409_v50, %v320_v3 }
 0x153   :  { %v322_v8 = vpop.f32.mrf.mxu0 }
 0x154   :  { %v1738_v9 = vmul.f32 -1.442695, %v2230_v5  ;;  %v2233_v10 = vadd.f32 %v455_v2, %v439_v6  ;;  %v440_v11 = vmul.f32 %v431_v56, %v410_v7  ;;  %v412_v12 = vadd.f32 %v411_v53, %v322_v8 }
 0x155   :  { %v326_v13 = vpop.f32.mrf.mxu0 }
 0x156   :  { %1829 = vpow2.f32 %v1738_v9  ;;  %v1739_v15 = vmul.f32 -1.442695, %v2233_v10  ;;  %v2236_v16 = vadd.f32 %v451_v60, %v440_v11  ;;  %v441_v17 = vmul.f32 %v435_v61, %v412_v12 }
 0x157   :  { %v416_v18 = vadd.f32 %v415_v58, %v326_v13  ;;  %v328_v19 = vpop.f32.mrf.mxu0 }
 0x158   :  { %1831 = vpow2.f32 %v1739_v15  ;;  %v1740_v20 = vmul.f32 -1.442695, %v2236_v16  ;;  %v2239_v21 = vadd.f32 %v455_v2, %v441_v17  ;;  %v418_v22 = vadd.f32 %v417_v4, %v328_v19 }
 0x159   :  { %v442_v23 = vmul.f32 %v431_v56, %v416_v18  ;;  %v332_v24 = vpop.f32.mrf.mxu0 }
 0x15a   :  { %1833 = vpow2.f32 %v1740_v20  ;;  %v1741_v26 = vmul.f32 -1.442695, %v2239_v21  ;;  %v443_v27 = vmul.f32 %v435_v61, %v418_v22  ;;  %v422_v28 = vadd.f32 %v421_v14, %v332_v24 }
 0x15b   :  { %v462_v29 = vadd.f32 %v451_v60, %v442_v23  ;;  %v334_v30 = vpop.f32.mrf.mxu0 }
 0x15c   :  { %1835 = vpow2.f32 %v1741_v26  ;;  %v463_v31 = vadd.f32 %v455_v2, %v443_v27  ;;  %v444_v32 = vmul.f32 %v431_v56, %v422_v28  ;;  %v424_v33 = vadd.f32 %v423_v25, %v334_v30  ;;  %v838_v27 = vld [vmem:[#allocation10 + $0x4e8] sm:$0xff]  ;;  %v837_v30 = vld [vmem:[#allocation10 + $0x4e0] sm:$0xff] }
 0x15d   :  { %v1742_v34 = vmul.f32 -1.442695, %v462_v29 }
 0x15e   :  { %v1743_v35 = vmul.f32 -1.442695, %v463_v31  ;;  %v464_v36 = vadd.f32 %v451_v60, %v444_v32  ;;  %v445_v37 = vmul.f32 %v435_v61, %v424_v33 }
 0x15f   :  { %1837 = vpow2.f32 %v1742_v34  ;;  %v836_v34 = vld [vmem:[#allocation10 + $0x4d8] sm:$0xff] }
 0x160   :  { %1839 = vpow2.f32 %v1743_v35  ;;  %v1744_v38 = vmul.f32 -1.442695, %v464_v36  ;;  %v2242_v39 = vadd.f32 %v455_v2, %v445_v37 }
 0x162   :  { %1841 = vpow2.f32 %v1744_v38  ;;  %v1745_v40 = vmul.f32 -1.442695, %v2242_v39 }
 0x163   :  { %v1830_v41 = vpop.eup %1829 }
 0x164   :  { %v490_v42 = vadd.f32 1.0, %v1830_v41  ;;  %1843 = vpow2.f32 %v1745_v40  ;;  %v834_v41 = vld [vmem:[#allocation10 + $0x4c8] sm:$0xff] }
 0x165   :  { %v1832_v43 = vpop.eup %1831 }
 0x166   :  { %1845 = vrcp.f32 %v490_v42  ;;  %v491_v44 = vadd.f32 1.0, %v1832_v43  ;;  %v833_v43 = vld [vmem:[#allocation10 + $0x4c0] sm:$0xff] }
 0x167   :  { %v1834_v45 = vpop.eup %1833 }
 0x168   :  { %1847 = vrcp.f32 %v491_v44  ;;  %v492_v46 = vadd.f32 1.0, %v1834_v45  ;;  %v832_v45 = vld [vmem:[#allocation10 + $0x4b8] sm:$0xff] }
 0x169   :  { %v1836_v0 = vpop.eup %1835 }
 0x16a   :  { %1849 = vrcp.f32 %v492_v46  ;;  %v493_v47 = vadd.f32 1.0, %v1836_v0 }
 0x16c   :  { %v1838_v48 = vpop.eup %1837  ;;  %1851 = vrcp.f32 %v493_v47 }
 0x16d   :  { %v1840_v50 = vpop.eup %1839  ;;  %v494_v52 = vadd.f32 1.0, %v1838_v48 }
 0x16e   :  { %v495_v53 = vadd.f32 1.0, %v1840_v50 }
 0x16f   :  { %v1842_v55 = vpop.eup %1841  ;;  %1853 = vrcp.f32 %v494_v52 }
 0x170   :  { %1855 = vrcp.f32 %v495_v53  ;;  %v496_v56 = vadd.f32 1.0, %v1842_v55  ;;  %v831_v53 = vld [vmem:[#allocation10 + $0x4b0] sm:$0xff] }
 0x171   :  { %v1844_v57 = vpop.eup %1843 }
 0x172   :  { %1857 = vrcp.f32 %v496_v56  ;;  %v497_v58 = vadd.f32 1.0, %v1844_v57  ;;  %v830_v56 = vld [vmem:[#allocation10 + $0x4a8] sm:$0xff] }
 0x173   :  { %v1846_v59 = vpop.eup %1845 }
 0x174   :  { %v514_v60 = vmul.f32 %v1846_v59, %v2230_v5  ;;  %1859 = vrcp.f32 %v497_v58 }
 0x175   :  { %v1848_v61 = vpop.eup %1847 }
 0x176   :  { %v543_v62 = vrot.slane %v514_v60, 7  ;;  %v515_v63 = vmul.f32 %v1848_v61, %v2233_v10  ;;  %v829_v60 = vld [vmem:[#allocation10 + $0x4a0] sm:$0xff] }
 0x177   :  { %v1850_v1 = vpop.eup %1849 }
 0x178   :  { %567 = vst [vmem:[#allocation3 + $0x30] sm:$0xfe] %v543_v62  ;;  %v544_v2 = vrot.slane %v515_v63, 7  ;;  %v516_v3 = vmul.f32 %v1850_v1, %v2236_v16  ;;  %v828_v63 = vld [vmem:[#allocation10 + $0x498] sm:$0xff] }
 0x179   :  { %v1852_v4 = vpop.eup %1851 }
 0x17a   :  { %568 = vst [vmem:[#allocation3] sm:$0xfe] %v544_v2  ;;  %v545_v6 = vrot.slane %v516_v3, 7  ;;  %v517_v7 = vmul.f32 %v1852_v4, %v2239_v21  ;;  %v839_v21 = vld [vmem:[#allocation10 + $0x4f0] sm:$0xff] }
 0x17b   :  { %v827_v4 = vld [vmem:[#allocation10 + $0x490] sm:$0xff] }
 0x17c   :  { %v1854_v8 = vpop.eup %1853  ;;  %v2250_v9 = vsel %vm542_vm0, %v543_v62, %v545_v6  ;;  %571 = vst [vmem:[#allocation3 + $0x50] sm:$0x1] %v545_v6  ;;  %v547_v5 = vrot.slane %v517_v7, 7  ;;  %v826_v7 = vld [vmem:[#allocation10 + $0x488] sm:$0xff] }
 0x17d   :  { %v1856_v11 = vpop.eup %1855  ;;  %v518_v12 = vmul.f32 %v1854_v8, %v462_v29 }
 0x17e   :  { %v2253_v10 = vsel %vm542_vm0, %v544_v2, %v547_v5  ;;  %572 = vst [vmem:[#allocation3 + $0x20] sm:$0x1] %v547_v5  ;;  %v519_v13 = vmul.f32 %v1856_v11, %v463_v31  ;;  %v609_v31 = vrot.slane %v2250_v9, 1 }
 0x17f   :  { %v1858_v14 = vpop.eup %1857  ;;  %v549_v15 = vrot.slane %v518_v12, 7  ;;  %v587_v16 = vld [vmem:[#allocation3 + $0x30] sm:$0xfe]  ;;  %v612_v28 = vrot.slane %v2253_v10, 1  ;;  %v657_v3 = vrot.slane %v2253_v10, 2  ;;  %v825_v12 = vld [vmem:[#allocation10 + $0x480] sm:$0xff] }
 0x180   :  { %v550_v17 = vrot.slane %v519_v13, 7  ;;  %v520_v18 = vmul.f32 %v1858_v14, %v464_v36  ;;  %v608_v23 = vrot.slane %v587_v16, 1  ;;  %v579_v26 = vld [vmem:[#allocation3 + $0x30] sm:$0xff]  ;;  %v824_v14 = vld [vmem:[#allocation10 + $0x478] sm:$0xff] }
 0x181   :  { %v1860_v19 = vpop.eup %1859  ;;  %573 = vst [vmem:[#allocation3 + $0x8] sm:$0xfe] %v549_v15  ;;  %v580_v20 = vld [vmem:[#allocation3] sm:$0xff]  ;;  %v835_v36 = vld [vmem:[#allocation10 + $0x4d0] sm:$0xff] }
 0x182   :  { %v588_v22 = vld [vmem:[#allocation3] sm:$0xfe]  ;;  %574 = vst [vmem:[#allocation3 + $0x38] sm:$0xfe] %v550_v17  ;;  %v551_v24 = vrot.slane %v520_v18, 7  ;;  %v521_v25 = vmul.f32 %v1860_v19, %v2242_v39  ;;  %937 = vmatprep.mubr.f32.mxu1 %v580_v20  ;;  %v610_v37 = vsel %vm607_vm1, %v608_v23, %v609_v31  ;;  %v823_v16 = vld [vmem:[#allocation10 + $0x470] sm:$0xff] }
 0x183   :  { %v611_v29 = vrot.slane %v588_v22, 1  ;;  %938 = vmatmul.mubr.f32.vlgmr.msra.gmra.mxu1 %v579_v26  ;;  %v589_v39 = vld [vmem:[#allocation3 + $0x50] sm:$0x1]  ;;  %v637_v44 = vld [vmem:[#allocation3] sm:$0xfc]  ;;  %v820_v20 = vld [vmem:[#allocation10 + $0x458] sm:$0xff] }
 0x184   :  { %v2259_v32 = vsel %vm542_vm0, %v549_v15, %v551_v24  ;;  %577 = vst [vmem:[#allocation3 + $0x10] sm:$0x1] %v551_v24  ;;  %v553_v33 = vrot.slane %v521_v25, 7  ;;  %1052 = vmatpush1.msra.mxu1 %v839_v21  ;;  %943 = vmatprep.mubr.f32.mxu1 %v2253_v10  ;;  %v614_v48 = vrot.slane %v589_v39, 1  ;;  %v656_v61 = vrot.slane %v637_v44, 2  ;;  %v821_v19 = vld [vmem:[#allocation10 + $0x460] sm:$0xff] }
 0x185   :  { %v613_v35 = vsel %vm607_vm1, %v611_v29, %v612_v28  ;;  %1053 = vmatprep.subr.mxu1 %v838_v27  ;;  %v590_v38 = vld [vmem:[#allocation3 + $0x20] sm:$0x1]  ;;  %v619_v57 = vrot.slane %v2259_v32, 1  ;;  %v819_v21 = vld [vmem:[#allocation10 + $0x450] sm:$0xff]  ;;  %v818_v22 = vld [vmem:[#allocation10 + $0x448] sm:$0xff] }
 0x186   :  { %1026 = vmatprep.mubr.f32.mxu0 %v613_v35  ;;  %v2265_v40 = vsel %vm542_vm0, %v550_v17, %v553_v33  ;;  %578 = vst [vmem:[#allocation3 + $0x40] sm:$0x1] %v553_v33  ;;  %1054 = vmatpush1.msra.mxu1 %v837_v30  ;;  %v616_v42 = vrot.slane %v590_v38, 1  ;;  %v615_v1 = vsel %vm607_vm1, %v609_v31, %v614_v48  ;;  %v822_v17 = vld [vmem:[#allocation10 + $0x468] sm:$0xff]  ;;  %v817_v23 = vld [vmem:[#allocation10 + $0x440] sm:$0xff]  ;;  %v816_v24 = vld [vmem:[#allocation10 + $0x438] sm:$0xff] }
 0x187   :  { %1027 = vmatmul.mubr.f32.vlgmr.msra.gmra.mxu0 %v610_v37  ;;  %1055 = vmatprep.subr.mxu1 %v836_v34  ;;  %v622_v47 = vrot.slane %v2265_v40, 1  ;;  %v658_v13 = vsel %vm652_vm2, %v656_v61, %v657_v3  ;;  %v815_v25 = vld [vmem:[#allocation10 + $0x430] sm:$0xff]  ;;  %v814_v26 = vld [vmem:[#allocation10 + $0x428] sm:$0xff]  ;;  %v813_v27 = vld [vmem:[#allocation10 + $0x420] sm:$0xff] }
 0x188   :  { %944 = vmatmul.mubr.f32.gmra.mxu1 %v2250_v9  ;;  %v583_v46 = vld [vmem:[#allocation3 + $0x8] sm:$0xff]  ;;  %v617_v0 = vsel %vm607_vm1, %v612_v28, %v616_v42  ;;  %v812_v28 = vld [vmem:[#allocation10 + $0x418] sm:$0xff]  ;;  %v811_v29 = vld [vmem:[#allocation10 + $0x410] sm:$0xff] }
 0x189   :  { %1056 = vmatpush1.msra.mxu1 %v835_v36  ;;  %v591_v50 = vld [vmem:[#allocation3 + $0x8] sm:$0xfe]  ;;  %v584_v52 = vld [vmem:[#allocation3 + $0x38] sm:$0xff]  ;;  %1032 = vmatprep.mubr.f32.mxu0 %v617_v0 }
 0x18a   :  { %1057 = vmatprep.subr.mxu1 %v834_v41  ;;  %v592_v55 = vld [vmem:[#allocation3 + $0x38] sm:$0xfe]  ;;  %949 = vmatprep.mubr.f32.mxu1 %v584_v52  ;;  %v618_v59 = vrot.slane %v591_v50, 1  ;;  %v810_v30 = vld [vmem:[#allocation10 + $0x408] sm:$0xff]  ;;  %v809_v31 = vld [vmem:[#allocation10 + $0x400] sm:$0xff] }
 0x18b   :  { %1058 = vmatpush1.msra.mxu1 %v833_v43  ;;  %v621_v58 = vrot.slane %v592_v55, 1  ;;  %v593_v62 = vld [vmem:[#allocation3 + $0x10] sm:$0x1]  ;;  %1033 = vmatmul.mubr.f32.gmra.mxu0 %v615_v1  ;;  %v872_v33 = vld [vmem:[#allocation10 + $0x5f8] sm:$0xff]  ;;  %v871_v34 = vld [vmem:[#allocation10 + $0x5f0] sm:$0xff] }
 0x18c   :  { %1059 = vmatprep.subr.mxu1 %v832_v45  ;;  %950 = vmatmul.mubr.f32.gmra.mxu1 %v583_v46  ;;  %v620_v8 = vsel %vm607_vm1, %v618_v59, %v619_v57  ;;  %v624_v11 = vrot.slane %v593_v62, 1  ;;  %v870_v35 = vld [vmem:[#allocation10 + $0x5e8] sm:$0xff]  ;;  %v869_v36 = vld [vmem:[#allocation10 + $0x5e0] sm:$0xff]  ;;  %v868_v37 = vld [vmem:[#allocation10 + $0x5d8] sm:$0xff] }
 0x18d   :  { %1060 = vmatpush1.msra.mxu1 %v831_v53  ;;  %955 = vmatprep.mubr.f32.mxu1 %v2265_v40  ;;  %v623_v2 = vsel %vm607_vm1, %v621_v58, %v622_v47  ;;  %v594_v6 = vld [vmem:[#allocation3 + $0x40] sm:$0x1]  ;;  %v867_v38 = vld [vmem:[#allocation10 + $0x5d0] sm:$0xff]  ;;  %v866_v39 = vld [vmem:[#allocation10 + $0x5c8] sm:$0xff] }
 0x18e   :  { %1061 = vmatprep.subr.mxu1 %v830_v56  ;;  %1038 = vmatprep.mubr.f32.mxu0 %v623_v2  ;;  %v626_v5 = vrot.slane %v594_v6, 1  ;;  %v625_v18 = vsel %vm607_vm1, %v619_v57, %v624_v11  ;;  %v865_v41 = vld [vmem:[#allocation10 + $0x5c0] sm:$0xff]  ;;  %v864_v42 = vld [vmem:[#allocation10 + $0x5b8] sm:$0xff]  ;;  %v863_v43 = vld [vmem:[#allocation10 + $0x5b0] sm:$0xff] }
 0x18f   :  { %1062 = vmatpush1.msra.mxu1 %v829_v60  ;;  %1039 = vmatmul.mubr.f32.gmra.mxu0 %v620_v8  ;;  %v862_v44 = vld [vmem:[#allocation10 + $0x5a8] sm:$0xff]  ;;  %v861_v45 = vld [vmem:[#allocation10 + $0x5a0] sm:$0xff]  ;;  %v860_v46 = vld [vmem:[#allocation10 + $0x598] sm:$0xff] }
 0x190   :  { %1063 = vmatprep.subr.mxu1 %v828_v63  ;;  %956 = vmatmul.mubr.f32.gmra.mxu1 %v2259_v32  ;;  %v627_v15 = vsel %vm607_vm1, %v622_v47, %v626_v5  ;;  %v859_v0 = vld [vmem:[#allocation10 + $0x590] sm:$0xff]  ;;  %v858_v47 = vld [vmem:[#allocation10 + $0x588] sm:$0xff]  ;;  %v857_v48 = vld [vmem:[#allocation10 + $0x580] sm:$0xff] }
 0x191   :  { %1064 = vmatpush1.msra.mxu1 %v827_v4  ;;  %1115 = vmatprep.mubr.f32.mxu1 %v658_v13  ;;  %v856_v50 = vld [vmem:[#allocation10 + $0x578] sm:$0xff]  ;;  %v855_v52 = vld [vmem:[#allocation10 + $0x570] sm:$0xff]  ;;  %v854_v53 = vld [vmem:[#allocation10 + $0x568] sm:$0xff]  ;;  %v654_v13 = vrot.slane %v2250_v9, 2  ;;  %v664_v9 = vrot.slane %v2259_v32, 2 }
 0x192   :  { %1065 = vmatprep.subr.mxu1 %v826_v7  ;;  %1044 = vmatprep.mubr.f32.mxu0 %v627_v15  ;;  %v853_v55 = vld [vmem:[#allocation10 + $0x560] sm:$0xff]  ;;  %v852_v56 = vld [vmem:[#allocation10 + $0x558] sm:$0xff]  ;;  %v851_v57 = vld [vmem:[#allocation10 + $0x550] sm:$0xff] }
 0x193   :  { %1066 = vmatpush1.msra.mxu1 %v825_v12  ;;  %1045 = vmatmul.mubr.f32.gmra.mxu0 %v625_v18  ;;  %v850_v58 = vld [vmem:[#allocation10 + $0x548] sm:$0xff]  ;;  %v849_v59 = vld [vmem:[#allocation10 + $0x540] sm:$0xff]  ;;  %v848_v60 = vld [vmem:[#allocation10 + $0x538] sm:$0xff] }
 0x194   :  { %1067 = vmatprep.subr.mxu1 %v824_v14  ;;  %v847_v61 = vld [vmem:[#allocation10 + $0x530] sm:$0xff]  ;;  %v846_v62 = vld [vmem:[#allocation10 + $0x528] sm:$0xff]  ;;  %v845_v63 = vld [vmem:[#allocation10 + $0x520] sm:$0xff] }
 0x195   :  { %1068 = vmatpush1.msra.mxu1 %v823_v16  ;;  %v636_v1 = vld [vmem:[#allocation3 + $0x30] sm:$0xfc]  ;;  %v844_v2 = vld [vmem:[#allocation10 + $0x518] sm:$0xff]  ;;  %v842_v7 = vld [vmem:[#allocation10 + $0x508] sm:$0xff] }
 0x196   :  { %1069 = vmatprep.subr.mxu1 %v822_v17  ;;  %v639_v4 = vld [vmem:[#allocation3 + $0x20] sm:$0x3]  ;;  %v843_v6 = vld [vmem:[#allocation10 + $0x510] sm:$0xff]  ;;  %v653_v8 = vrot.slane %v636_v1, 2  ;;  %v841_v5 = vld [vmem:[#allocation10 + $0x500] sm:$0xff]  ;;  %v667_v17 = vrot.slane %v2265_v40, 2 }
 0x197   :  { %1070 = vmatpush1.msra.mxu1 %v821_v19  ;;  %v661_v11 = vrot.slane %v639_v4, 2  ;;  %v638_v12 = vld [vmem:[#allocation3 + $0x50] sm:$0x3]  ;;  %v641_v14 = vld [vmem:[#allocation3 + $0x38] sm:$0xfc] }
 0x198   :  { %1071 = vmatprep.subr.mxu1 %v820_v20  ;;  %v655_v15 = vsel %vm652_vm2, %v653_v8, %v654_v13  ;;  %v659_v16 = vrot.slane %v638_v12, 2  ;;  %v666_v19 = vrot.slane %v641_v14, 2  ;;  %v640_v20 = vld [vmem:[#allocation3 + $0x8] sm:$0xfc] }
 0x199   :  { %1072 = vmatpush1.msra.mxu1 %v819_v21  ;;  %v662_v18 = vsel %vm652_vm2, %v657_v3, %v661_v11  ;;  %v643_v21 = vld [vmem:[#allocation3 + $0x40] sm:$0x3] }
 0x19a   :  { %1073 = vmatprep.subr.mxu1 %v818_v22  ;;  %v660_v22 = vsel %vm652_vm2, %v654_v13, %v659_v16 }
 0x19b   :  { %1074 = vmatpush1.msra.mxu1 %v817_v23  ;;  %v663_v23 = vrot.slane %v640_v20, 2 }
 0x19c   :  { %1075 = vmatprep.subr.mxu1 %v816_v24  ;;  %v668_v24 = vsel %vm652_vm2, %v666_v19, %v667_v17 }
 0x19d   :  { %1076 = vmatpush1.msra.mxu1 %v815_v25  ;;  %v671_v25 = vrot.slane %v643_v21, 2  ;;  %v665_v40 = vsel %vm652_vm2, %v663_v23, %v664_v9 }
 0x19e   :  { %1077 = vmatprep.subr.mxu1 %v814_v26  ;;  %v642_v26 = vld [vmem:[#allocation3 + $0x10] sm:$0x3] }
 0x19f   :  { %1078 = vmatpush1.msra.mxu1 %v813_v27  ;;  %v669_v10 = vrot.slane %v642_v26, 2  ;;  %v672_v3 = vsel %vm652_vm2, %v667_v17, %v671_v25 }
 0x1a0   :  { %1079 = vmatprep.subr.mxu1 %v812_v28 }
 0x1a1   :  { %1080 = vmatpush1.msra.mxu1 %v811_v29  ;;  %v670_v27 = vsel %vm652_vm2, %v664_v9, %v669_v10 }
 0x1a2   :  { %1081 = vmatprep.subr.mxu1 %v810_v30 }
 0x1a3   :  { %1082 = vmatpush1.msra.mxu1 %v809_v31 }
 0x1a4   :  { %1083 = vmatprep.subr.mxu1 %v872_v33 }
 0x1a5   :  { %1084 = vmatpush2.msra.mxu1 %v871_v34 }
 0x1a6   :  { %1085 = vmatprep.subr.mxu1 %v870_v35 }
 0x1a7   :  { %1086 = vmatpush2.msra.mxu1 %v869_v36 }
 0x1a8   :  { %1087 = vmatprep.subr.mxu1 %v868_v37 }
 0x1a9   :  { %1088 = vmatpush2.msra.mxu1 %v867_v38 }
 0x1aa   :  { %1089 = vmatprep.subr.mxu1 %v866_v39  ;;  %v1140_v39 = vld [vmem:[%s2433_s5] sm:$0x3]  ;;  %s2074_s5 = smov 96  }
 0x1ab   :  { %1090 = vmatpush2.msra.mxu1 %v865_v41 }
 0x1ac   :  { %1091 = vmatprep.subr.mxu1 %v864_v42 }
 0x1ad   :  { %1092 = vmatpush2.msra.mxu1 %v863_v43  ;;  %v1160_v43 = vld [vmem:[%s2434_s6] sm:$0x3]  ;;  %s2075_s6 = smov 112  }
 0x1ae   :  { %1093 = vmatprep.subr.mxu1 %v862_v44  ;;  %v1169_v13 = vrot.slane %v1160_v43, %v2224_v54 }
 0x1af   :  { %1094 = vmatpush2.msra.mxu1 %v861_v45  ;;  %v1145_v45 = vrot.slane %v1140_v39, %v2218_v51 }
 0x1b0   :  { %1095 = vmatprep.subr.mxu1 %v860_v46 }
 0x1b1   :  { %1096 = vmatpush2.msra.mxu1 %v859_v0 }
 0x1b2   :  { %1097 = vmatprep.subr.mxu1 %v858_v47  ;;  %v1165_v47 = vrot.slane %v1160_v43, %v2218_v51 }
 0x1b3   :  { %1098 = vmatpush2.msra.mxu1 %v857_v48 }
 0x1b4   :  { %1099 = vmatprep.subr.mxu1 %v856_v50 }
 0x1b5   :  { %1100 = vmatpush2.msra.mxu1 %v855_v52 }
 0x1b6   :  { %1101 = vmatprep.subr.mxu1 %v854_v53 }
 0x1b7   :  { %1102 = vmatpush2.msra.mxu1 %v853_v55 }
 0x1b8   :  { %1103 = vmatprep.subr.mxu1 %v852_v56 }
 0x1b9   :  { %1104 = vmatpush2.msra.mxu1 %v851_v57 }
 0x1ba   :  { %1105 = vmatprep.subr.mxu1 %v850_v58 }
 0x1bb   :  { %1106 = vmatpush2.msra.mxu1 %v849_v59 }
 0x1bc   :  { %1107 = vmatprep.subr.mxu1 %v848_v60 }
 0x1bd   :  { %1108 = vmatpush2.msra.mxu1 %v847_v61  ;;  %v1149_v61 = vrot.slane %v1140_v39, %v2224_v54 }
 0x1be   :  { %1109 = vmatprep.subr.mxu1 %v846_v62 }
 0x1bf   :  { %1110 = vmatpush2.msra.mxu1 %v845_v63 }
 0x1c0   :  { %1111 = vmatprep.subr.mxu1 %v844_v2 }
 0x1c1   :  { %1112 = vmatpush2.msra.mxu1 %v843_v6 }
 0x1c2   :  { %1113 = vmatprep.subr.mxu1 %v842_v7 }
 0x1c3   :  { %1114 = vmatpush2.msra.mxu1 %v841_v5 }
 0x1c4   :  { %1116 = vmatmul.mubr.f32.vlgmr.msra.gmra.mxu1 %v655_v15 }
 0x1c5   :  { %1121 = vmatprep.mubr.f32.mxu1 %v662_v18 }
 0x1c8   :  { %1122 = vmatmul.mubr.f32.gmra.mxu1 %v660_v22 }
 0x1c9   :  { %1127 = vmatprep.mubr.f32.mxu1 %v668_v24 }
 0x1cc   :  { %1128 = vmatmul.mubr.f32.gmra.mxu1 %v665_v40 }
 0x1cd   :  { %1133 = vmatprep.mubr.f32.mxu1 %v672_v3 }
 0x1d0   :  { %1134 = vmatmul.mubr.f32.gmra.mxu1 %v670_v27 }
 0x243   :  { %v939_v32 = vpop.f32.mrf.mxu1 }
 0x245   :  { %v941_v28 = vpop.f32.mrf.mxu1 }
 0x247   :  { %v1028_v31 = vpop.f32.mrf.mxu0 }
 0x248   :  { %v945_v29 = vpop.f32.mrf.mxu1  ;;  %v1029_v44 = vadd.f32 %v1028_v31, %v939_v32 }
 0x249   :  { %v1030_v33 = vpop.f32.mrf.mxu0 }
 0x24a   :  { %v947_v30 = vpop.f32.mrf.mxu1  ;;  %v1031_v56 = vadd.f32 %v1030_v33, %v941_v28 }
 0x24b   :  { %v1034_v35 = vpop.f32.mrf.mxu0 }
 0x24c   :  { %v951_v34 = vpop.f32.mrf.mxu1  ;;  %v1035_v52 = vadd.f32 %v1034_v35, %v945_v29 }
 0x24d   :  { %v1036_v37 = vpop.f32.mrf.mxu0 }
 0x24e   :  { %v953_v36 = vpop.f32.mrf.mxu1  ;;  %v1037_v57 = vadd.f32 %v1036_v37, %v947_v30 }
 0x24f   :  { %v1040_v41 = vpop.f32.mrf.mxu0 }
 0x250   :  { %v957_v38 = vpop.f32.mrf.mxu1  ;;  %v1041_v6 = vadd.f32 %v1040_v41, %v951_v34 }
 0x251   :  { %v1042_v48 = vpop.f32.mrf.mxu0 }
 0x252   :  { %v959_v42 = vpop.f32.mrf.mxu1  ;;  %v1043_v8 = vadd.f32 %v1042_v48, %v953_v36 }
 0x253   :  { %v1046_v60 = vpop.f32.mrf.mxu0 }
 0x254   :  { %v1047_v16 = vadd.f32 %v1046_v60, %v957_v38 }
 0x255   :  { %v1048_v12 = vpop.f32.mrf.mxu0 }
 0x256   :  { %v1049_v22 = vadd.f32 %v1048_v12, %v959_v42 }
 0x284   :  { %v1117_v46 = vpop.f32.mrf.mxu1 }
 0x285   :  { %v1118_v0 = vadd.f32 %v1117_v46, %v1029_v44 }
 0x286   :  { %v1119_v50 = vpop.f32.mrf.mxu1 }
 0x287   :  { %v1152_v53 = vmul.f32 %v1145_v45, %v1118_v0  ;;  %v1120_v1 = vadd.f32 %v1119_v50, %v1031_v56 }
 0x288   :  { %v1123_v55 = vpop.f32.mrf.mxu1 }
 0x289   :  { %v2302_v58 = vadd.f32 %v1165_v47, %v1152_v53  ;;  %v1124_v59 = vadd.f32 %v1123_v55, %v1035_v52  ;;  %v1153_v17 = vmul.f32 %v1149_v61, %v1120_v1 }
 0x28a   :  { %v1125_v62 = vpop.f32.mrf.mxu1 }
 0x28b   :  { %v1746_v63 = vmul.f32 -1.442695, %v2302_v58  ;;  %v1154_v2 = vmul.f32 %v1145_v45, %v1124_v59  ;;  %v1126_v4 = vadd.f32 %v1125_v62, %v1037_v57  ;;  %v2309_v40 = vadd.f32 %v1169_v13, %v1153_v17 }
 0x28c   :  { %v1129_v7 = vpop.f32.mrf.mxu1 }
 0x28d   :  { %1861 = vpow2.f32 %v1746_v63  ;;  %v1174_v5 = vadd.f32 %v1165_v47, %v1154_v2  ;;  %v1155_v11 = vmul.f32 %v1149_v61, %v1126_v4  ;;  %v1130_v14 = vadd.f32 %v1129_v7, %v1041_v6 }
 0x28e   :  { %v1131_v15 = vpop.f32.mrf.mxu1  ;;  %v1747_v31 = vmul.f32 -1.442695, %v2309_v40 }
 0x28f   :  { %v1748_v18 = vmul.f32 -1.442695, %v1174_v5  ;;  %v1132_v19 = vadd.f32 %v1131_v15, %v1043_v8  ;;  %v2307_v20 = vadd.f32 %v1169_v13, %v1155_v11  ;;  %v1156_v21 = vmul.f32 %v1145_v45, %v1130_v14 }
 0x290   :  { %v1135_v9 = vpop.f32.mrf.mxu1 }
 0x291   :  { %1863 = vpow2.f32 %v1748_v18  ;;  %v1136_v23 = vadd.f32 %v1135_v9, %v1047_v16  ;;  %v1176_v24 = vadd.f32 %v1165_v47, %v1156_v21  ;;  %v1157_v25 = vmul.f32 %v1149_v61, %v1132_v19 }
 0x292   :  { %v1137_v26 = vpop.f32.mrf.mxu1  ;;  %v1749_v27 = vmul.f32 -1.442695, %v2307_v20 }
 0x293   :  { %v1158_v10 = vmul.f32 %v1145_v45, %v1136_v23  ;;  %v1138_v3 = vadd.f32 %v1137_v26, %v1049_v22  ;;  %v1750_v32 = vmul.f32 -1.442695, %v1176_v24  ;;  %v2312_v30 = vadd.f32 %v1169_v13, %v1157_v25 }
 0x295   :  { %v1178_v28 = vadd.f32 %v1165_v47, %v1158_v10  ;;  %v1159_v29 = vmul.f32 %v1149_v61, %v1138_v3  ;;  %1865 = vpow2.f32 %v1750_v32  ;;  %v1751_v37 = vmul.f32 -1.442695, %v2312_v30 }
 0x296   :  { %1867 = vpow2.f32 %v1749_v27 }
 0x297   :  { %v1752_v33 = vmul.f32 -1.442695, %v1178_v28  ;;  %v2315_v34 = vadd.f32 %v1169_v13, %v1159_v29 }
 0x299   :  { %1869 = vpow2.f32 %v1752_v33  ;;  %v1753_v35 = vmul.f32 -1.442695, %v2315_v34 }
 0x29a   :  { %v1862_v36 = vpop.eup %1861  ;;  %1871 = vpow2.f32 %v1747_v31 }
 0x29b   :  { %v1204_v38 = vadd.f32 1.0, %v1862_v36  ;;  %1873 = vpow2.f32 %v1753_v35 }
 0x29c   :  { %1875 = vpow2.f32 %v1751_v37 }
 0x29d   :  { %1877 = vrcp.f32 %v1204_v38 }
 0x29e   :  { %v1864_v39 = vpop.eup %1863 }
 0x29f   :  { %v1206_v41 = vadd.f32 1.0, %v1864_v39 }
 0x2a1   :  { %1879 = vrcp.f32 %v1206_v41 }
 0x2a2   :  { %v1866_v42 = vpop.eup %1865 }
 0x2a3   :  { %v1208_v43 = vadd.f32 1.0, %v1866_v42  ;;  %v1868_v44 = vpop.eup %1867 }
 0x2a4   :  { %v1207_v47 = vadd.f32 1.0, %v1868_v44 }
 0x2a5   :  { %1881 = vrcp.f32 %v1208_v43 }
 0x2a6   :  { %v1870_v45 = vpop.eup %1869 }
 0x2a7   :  { %v1210_v46 = vadd.f32 1.0, %v1870_v45  ;;  %v1872_v0 = vpop.eup %1871 }
 0x2a8   :  { %v1874_v48 = vpop.eup %1873  ;;  %v1205_v52 = vadd.f32 1.0, %v1872_v0 }
 0x2a9   :  { %1883 = vrcp.f32 %v1210_v46  ;;  %v1876_v50 = vpop.eup %1875  ;;  %v1211_v55 = vadd.f32 1.0, %v1874_v48 }
 0x2aa   :  { %v1878_v53 = vpop.eup %1877  ;;  %1885 = vrcp.f32 %v1207_v47  ;;  %v1209_v60 = vadd.f32 1.0, %v1876_v50 }
 0x2ab   :  { %v2320_v57 = vmul.f32 %v1878_v53, %v2302_v58  ;;  %1887 = vrcp.f32 %v1205_v52 }
 0x2ac   :  { %1889 = vrcp.f32 %v1211_v55 }
 0x2ad   :  { %1891 = vrcp.f32 %v1209_v60 }
 0x2ae   :  { %v1880_v56 = vpop.eup %1879 }
 0x2af   :  { %v2322_v59 = vmul.f32 %v1880_v56, %v1174_v5 }
 0x2b1   :  { %v1236_v61 = vadd.f32 %v2322_v59, %v2320_v57 }
 0x2b2   :  { %v1882_v63 = vpop.eup %1881 }
 0x2b3   :  { %v1237_v62 = vrot.slane %v1236_v61, 4  ;;  %v2326_v6 = vmul.f32 %v1882_v63, %v1176_v24 }
 0x2b5   :  { %v1238_v1 = vadd.f32 %v1237_v62, %v1236_v61 }
 0x2b6   :  { %v1884_v2 = vpop.eup %1883 }
 0x2b7   :  { %v1239_v4 = vrot.slane %v1238_v1, 2  ;;  %v2328_v7 = vmul.f32 %v1884_v2, %v1178_v28  ;;  %v1886_v5 = vpop.eup %1885 }
 0x2b8   :  { %v1888_v13 = vpop.eup %1887  ;;  %v2335_v15 = vmul.f32 %v1886_v5, %v2307_v20 }
 0x2b9   :  { %v1240_v58 = vadd.f32 %v1239_v4, %v1238_v1  ;;  %v1250_v8 = vadd.f32 %v2328_v7, %v2326_v6  ;;  %v1890_v17 = vpop.eup %1889  ;;  %v2338_v18 = vmul.f32 %v1888_v13, %v2309_v40 }
 0x2ba   :  { %v1892_v21 = vpop.eup %1891  ;;  %v2347_v22 = vmul.f32 %v1890_v17, %v2315_v34 }
 0x2bb   :  { %v1241_v11 = vrot.slane %v1240_v58, 1  ;;  %v1251_v12 = vrot.slane %v1250_v8, 4  ;;  %v1243_v9 = vadd.f32 %v2335_v15, %v2338_v18  ;;  %v2350_v23 = vmul.f32 %v1892_v21, %v2312_v30 }
 0x2bd   :  { %v2332_v14 = vadd.f32 %v1241_v11, %v1240_v58  ;;  %v1252_v16 = vadd.f32 %v1251_v12, %v1250_v8  ;;  %v1244_v25 = vrot.slane %v1243_v9, 4  ;;  %v1257_v40 = vadd.f32 %v2347_v22, %v2350_v23 }
 0x2bf   :  { %v1253_v19 = vrot.slane %v1252_v16, 2  ;;  %1274 = vrot.lane.b32.xlu1 %v2332_v14, %s2074_s5  ;;  %1266 = vrot.lane.b32.xlu0 %v2332_v14, %s2075_s6  ;;  %v1245_v10 = vadd.f32 %v1244_v25, %v1243_v9  ;;  %v1258_v3 = vrot.slane %v1257_v40, 4 }
 0x2c1   :  { %v1254_v20 = vadd.f32 %v1253_v19, %v1252_v16  ;;  %v1246_v27 = vrot.slane %v1245_v10, 2  ;;  %v1259_v32 = vadd.f32 %v1258_v3, %v1257_v40 }
 0x2c3   :  { %v1255_v24 = vrot.slane %v1254_v20, 1  ;;  %1282 = vrot.lane.b32.xlu1 %v2332_v14, %s2076_s4  ;;  %v1247_v28 = vadd.f32 %v1246_v27, %v1245_v10  ;;  %v1260_v29 = vrot.slane %v1259_v32, 2 }
 0x2c5   :  { %v1256_v26 = vadd.f32 %v1255_v24, %v1254_v20  ;;  %v1248_v30 = vrot.slane %v1247_v28, 1  ;;  %v1261_v31 = vadd.f32 %v1260_v29, %v1259_v32 }
 0x2c7   :  { %1290 = vrot.lane.b32.xlu1 %v2332_v14, %s2077_s16  ;;  %1268 = vrot.lane.b32.xlu0 %v1256_v26, %s2075_s6  ;;  %v1249_v33 = vadd.f32 %v1248_v30, %v1247_v28  ;;  %v1262_v34 = vrot.slane %v1261_v31, 1 }
 0x2c9   :  { %v1263_v35 = vadd.f32 %v1262_v34, %v1261_v31 }
 0x2cb   :  { %1298 = vrot.lane.b32.xlu1 %v2332_v14, %s2078_s19  ;;  %1284 = vrot.lane.b32.xlu0 %v1256_v26, %s2076_s4 }
 0x2cf   :  { %1306 = vrot.lane.b32.xlu1 %v2332_v14, %s2079_s20  ;;  %1292 = vrot.lane.b32.xlu0 %v1256_v26, %s2077_s16 }
 0x2d3   :  { %1314 = vrot.lane.b32.xlu1 %v2332_v14, %s2065_s17  ;;  %1300 = vrot.lane.b32.xlu0 %v1256_v26, %s2078_s19 }
 0x2d7   :  { %1276 = vrot.lane.b32.xlu1 %v1256_v26, %s2074_s5  ;;  %1308 = vrot.lane.b32.xlu0 %v1256_v26, %s2079_s20 }
 0x2db   :  { %1326 = vrot.lane.b32.xlu1 %v1249_v33, %s2075_s6  ;;  %1316 = vrot.lane.b32.xlu0 %v1256_v26, %s2065_s17 }
 0x2df   :  { %1334 = vrot.lane.b32.xlu1 %v1249_v33, %s2074_s5  ;;  %1328 = vrot.lane.b32.xlu0 %v1263_v35, %s2075_s6 }
 0x2e3   :  { %1342 = vrot.lane.b32.xlu1 %v1249_v33, %s2076_s4  ;;  %1336 = vrot.lane.b32.xlu0 %v1263_v35, %s2074_s5 }
 0x2e7   :  { %1350 = vrot.lane.b32.xlu1 %v1249_v33, %s2077_s16  ;;  %1344 = vrot.lane.b32.xlu0 %v1263_v35, %s2076_s4 }
 0x2eb   :  { %1358 = vrot.lane.b32.xlu1 %v1249_v33, %s2078_s19  ;;  %1352 = vrot.lane.b32.xlu0 %v1263_v35, %s2077_s16 }
 0x2ef   :  { %1366 = vrot.lane.b32.xlu1 %v1249_v33, %s2079_s20  ;;  %1360 = vrot.lane.b32.xlu0 %v1263_v35, %s2078_s19 }
 0x2f3   :  { %1374 = vrot.lane.b32.xlu1 %v1249_v33, %s2065_s17  ;;  %1368 = vrot.lane.b32.xlu0 %v1263_v35, %s2079_s20 }
 0x2f7   :  { %1376 = vrot.lane.b32.xlu0 %v1263_v35, %s2065_s17 }
 0x331   :  { %v1275_v36 = vpop.permute.xlu1 %1274  ;;  %v1267_v37 = vpop.permute.xlu0 %1266 }
 0x332   :  { %v1272_v47 = vadd.f32 %v1267_v37, %v2332_v14 }
 0x334   :  { %v1280_v53 = vadd.f32 %v1275_v36, %v1272_v47 }
 0x335   :  { %v1283_v38 = vpop.permute.xlu1 %1282 }
 0x336   :  { %v1288_v62 = vadd.f32 %v1283_v38, %v1280_v53 }
 0x339   :  { %v1291_v39 = vpop.permute.xlu1 %1290  ;;  %v1269_v41 = vpop.permute.xlu0 %1268 }
 0x33a   :  { %v1273_v48 = vadd.f32 %v1269_v41, %v1256_v26  ;;  %v1296_v1 = vadd.f32 %v1291_v39, %v1288_v62  ;;  %v2080_v62 = vmov 1  }
 0x33b   :  { %1827 = vset.pattern.permute.xlu1 %v2080_v62 }
 0x33d   :  { %v1299_v42 = vpop.permute.xlu1 %1298  ;;  %v1285_v43 = vpop.permute.xlu0 %1284 }
 0x33e   :  { %v1304_v8 = vadd.f32 %v1299_v42, %v1296_v1  ;;  %v1754_v1 = vld [vmem:[#allocation12] ss:$0 sm:$0xff] }
 0x341   :  { %v1307_v44 = vpop.permute.xlu1 %1306  ;;  %v1293_v45 = vpop.permute.xlu0 %1292 }
 0x342   :  { %v1312_v11 = vadd.f32 %v1307_v44, %v1304_v8 }
 0x345   :  { %v1315_v46 = vpop.permute.xlu1 %1314  ;;  %v1301_v0 = vpop.permute.xlu0 %1300 }
 0x346   :  { %v1320_v16 = vadd.f32 %v1315_v46, %v1312_v11 }
 0x348   :  { %v1322_v20 = vadd.f32 %v1320_v16, %v1249_v33  ;;  %v1384_v33 = vld [vmem:[%s2435_s7] sm:$0x3] }
 0x349   :  { %v1277_v50 = vpop.permute.xlu1 %1276  ;;  %v1309_v52 = vpop.permute.xlu0 %1308  ;;  %v1460_v44 = vrot.slane %v1384_v33, %v2224_v54 }
 0x34a   :  { %v1281_v55 = vadd.f32 %v1277_v50, %v1273_v48 }
 0x34c   :  { %v1289_v56 = vadd.f32 %v1285_v43, %v1281_v55  ;;  %v1391_v43 = vrot.slane %v1384_v33, %v2218_v51  ;;  %v1577_v33 = vld [vmem:[#allocation13 + $0x30] sm:$0xff] }
 0x34d   :  { %v1327_v60 = vpop.permute.xlu1 %1326  ;;  %v1317_v61 = vpop.permute.xlu0 %1316 }
 0x34e   :  { %v1297_v63 = vadd.f32 %v1293_v45, %v1289_v56  ;;  %v1332_v24 = vadd.f32 %v1327_v60, %v1322_v20  ;;  %v1602_v20 = vld [vmem:[#allocation13 + $0xf8] sm:$0xff] }
 0x34f   :  { %1761 = vmatprep.subr.mxu0 %v1602_v20 }
 0x350   :  { %v1305_v2 = vadd.f32 %v1301_v0, %v1297_v63  ;;  %v2081_v63 = vmov 0  }
 0x351   :  { %v1335_v4 = vpop.permute.xlu1 %1334  ;;  %v1329_v58 = vpop.permute.xlu0 %1328  ;;  %1826 = vset.pattern.permute.xlu0 %v2081_v63 }
 0x352   :  { %v1313_v5 = vadd.f32 %v1309_v52, %v1305_v2  ;;  %v1340_v10 = vadd.f32 %v1335_v4, %v1332_v24  ;;  %v1586_v24 = vld [vmem:[#allocation13 + $0x78] sm:$0xff] }
 0x353   :  { %1762 = vmatpush3.msra.mxu0 %v1586_v24 }
 0x354   :  { %v1321_v12 = vadd.f32 %v1317_v61, %v1313_v5 }
 0x355   :  { %v1343_v13 = vpop.permute.xlu1 %1342  ;;  %v1337_v14 = vpop.permute.xlu0 %1336 }
 0x356   :  { %v1323_v17 = vadd.f32 %v1321_v12, %v1263_v35  ;;  %v1348_v3 = vadd.f32 %v1343_v13, %v1340_v10  ;;  %v1584_v10 = vld [vmem:[#allocation13 + $0x68] sm:$0xff] }
 0x358   :  { %v1333_v19 = vadd.f32 %v1329_v58, %v1323_v17 }
 0x359   :  { %v1351_v21 = vpop.permute.xlu1 %1350  ;;  %v1345_v9 = vpop.permute.xlu0 %1344 }
 0x35a   :  { %v1341_v25 = vadd.f32 %v1337_v14, %v1333_v19  ;;  %v1356_v29 = vadd.f32 %v1351_v21, %v1348_v3  ;;  %v1599_v3 = vld [vmem:[#allocation13 + $0xe0] sm:$0xff] }
 0x35c   :  { %v1349_v27 = vadd.f32 %v1345_v9, %v1341_v25  ;;  %v1601_v25 = vld [vmem:[#allocation13 + $0xf0] sm:$0xff] }
 0x35d   :  { %v1359_v26 = vpop.permute.xlu1 %1358  ;;  %v1353_v40 = vpop.permute.xlu0 %1352  ;;  %1763 = vmatprep.subr.mxu0 %v1601_v25 }
 0x35e   :  { %v1364_v30 = vadd.f32 %v1359_v26, %v1356_v29  ;;  %v1357_v31 = vadd.f32 %v1353_v40, %v1349_v27  ;;  %v1585_v26 = vld [vmem:[#allocation13 + $0x70] sm:$0xff]  ;;  %v1600_v40 = vld [vmem:[#allocation13 + $0xe8] sm:$0xff]  ;;  %v1583_v27 = vld [vmem:[#allocation13 + $0x60] sm:$0xff] }
 0x35f   :  { %1764 = vmatpush3.msra.mxu0 %v1585_v26  ;;  %v1597_v29 = vld [vmem:[#allocation13 + $0xd0] sm:$0xff] }
 0x360   :  { %1765 = vmatprep.subr.mxu0 %v1600_v40 }
 0x361   :  { %v1367_v32 = vpop.permute.xlu1 %1366  ;;  %v1361_v28 = vpop.permute.xlu0 %1360  ;;  %1766 = vmatpush3.msra.mxu0 %v1584_v10 }
 0x362   :  { %v1372_v37 = vadd.f32 %v1367_v32, %v1364_v30  ;;  %v1365_v35 = vadd.f32 %v1361_v28, %v1357_v31  ;;  %1767 = vmatprep.subr.mxu0 %v1599_v3  ;;  %v1598_v32 = vld [vmem:[#allocation13 + $0xd8] sm:$0xff]  ;;  %v1581_v30 = vld [vmem:[#allocation13 + $0x50] sm:$0xff]  ;;  %v1596_v31 = vld [vmem:[#allocation13 + $0xc8] sm:$0xff] }
 0x363   :  { %1768 = vmatpush3.msra.mxu0 %v1583_v27  ;;  %v1582_v28 = vld [vmem:[#allocation13 + $0x58] sm:$0xff] }
 0x364   :  { %1769 = vmatprep.subr.mxu0 %v1598_v32 }
 0x365   :  { %v1375_v34 = vpop.permute.xlu1 %1374  ;;  %v1369_v36 = vpop.permute.xlu0 %1368  ;;  %1770 = vmatpush3.msra.mxu0 %v1582_v28  ;;  %v2082_v28 = vmov 1966171168  }
 0x366   :  { %v1380_v38 = vadd.f32 %v1375_v34, %v1372_v37  ;;  %v1373_v39 = vadd.f32 %v1369_v36, %v1365_v35  ;;  %1771 = vmatprep.subr.mxu0 %v1597_v29  ;;  %v1580_v34 = vld [vmem:[#allocation13 + $0x48] sm:$0xff]  ;;  %v1595_v36 = vld [vmem:[#allocation13 + $0xc0] sm:$0xff]  ;;  %v1594_v35 = vld [vmem:[#allocation13 + $0xb8] sm:$0xff]  ;;  %v1522_v29 = vunpack.c.l.s4 %v2082_v28 }
 0x367   :  { %1772 = vmatpush3.msra.mxu0 %v1581_v30  ;;  %v1579_v37 = vld [vmem:[#allocation13 + $0x40] sm:$0xff] }
 0x368   :  { %v1382_v45 = vmul.f32 0.00390625, %v1380_v38  ;;  %1773 = vmatprep.subr.mxu0 %v1596_v31  ;;  %v1578_v38 = vld [vmem:[#allocation13 + $0x38] sm:$0xff]  ;;  %v1523_v30 = vunpack.c.0.s8 %v1522_v29 }
 0x369   :  { %v1377_v41 = vpop.permute.xlu0 %1376  ;;  %1774 = vmatpush3.msra.mxu0 %v1580_v34 }
 0x36a   :  { %v1381_v42 = vadd.f32 %v1377_v41, %v1373_v39  ;;  %v1392_v48 = vmul.f32 %v1391_v43, %v1382_v45  ;;  %v1461_v50 = vmul.f32 %v1460_v44, %v1382_v45  ;;  %1775 = vmatprep.subr.mxu0 %v1595_v36  ;;  %v1593_v39 = vld [vmem:[#allocation13 + $0xb0] sm:$0xff]  ;;  %v1592_v41 = vld [vmem:[#allocation13 + $0xa8] sm:$0xff]  ;;  %v1590_v45 = vld [vmem:[#allocation13 + $0x98] sm:$0xff]  ;;  %v1526_v34 = vsub.s32 %v1523_v30, %v2215_v49 }
 0x36b   :  { %1776 = vmatpush3.msra.mxu0 %v1579_v37 }
 0x36c   :  { %v1383_v46 = vmul.f32 0.00390625, %v1381_v42  ;;  %1777 = vmatprep.subr.mxu0 %v1594_v35  ;;  %v1576_v42 = vld [vmem:[#allocation13 + $0x28] sm:$0xff] }
 0x36d   :  { %1778 = vmatpush3.msra.mxu0 %v1578_v38 }
 0x36e   :  { %v1393_v0 = vmul.f32 %v1391_v43, %v1383_v46  ;;  %v1462_v47 = vmul.f32 %v1460_v44, %v1383_v46  ;;  %1779 = vmatprep.subr.mxu0 %v1593_v39  ;;  %v1591_v43 = vld [vmem:[#allocation13 + $0xa0] sm:$0xff]  ;;  %v1574_v46 = vld [vmem:[#allocation13 + $0x18] sm:$0xff] }
 0x36f   :  { %1780 = vmatpush3.msra.mxu0 %v1577_v33  ;;  %v1575_v44 = vld [vmem:[#allocation13 + $0x20] sm:$0xff] }
 0x370   :  { %v1396_v52 = vrot.slane %v1393_v0, 7  ;;  %v1465_v53 = vrot.slane %v1462_v47, 7  ;;  %1781 = vmatprep.subr.mxu0 %v1592_v41  ;;  %v1589_v0 = vld [vmem:[#allocation13 + $0x90] sm:$0xff] }
 0x371   :  { %1782 = vmatpush3.msra.mxu0 %v1576_v42  ;;  %v1573_v47 = vld [vmem:[#allocation13 + $0x10] sm:$0xff] }
 0x372   :  { %v1466_v55 = vsel %vm1397_vm3, %v1465_v53, %v1461_v50  ;;  %v1398_v56 = vsel %vm1397_vm3, %v1396_v52, %v1392_v48  ;;  %1783 = vmatprep.subr.mxu0 %v1591_v43  ;;  %v1588_v48 = vld [vmem:[#allocation13 + $0x88] sm:$0xff]  ;;  %v1587_v52 = vld [vmem:[#allocation13 + $0x80] sm:$0xff] }
 0x373   :  { %v1468_v60 = vsel %vm1400_vm4, %v1466_v55, 0.0  ;;  %v1401_v61 = vsel %vm1400_vm4, %v1398_v56, 0.0  ;;  %1784 = vmatpush3.msra.mxu0 %v1575_v44  ;;  %v1572_v50 = vld [vmem:[#allocation13 + $0x8] sm:$0xff]  ;;  %v1571_v53 = vld [vmem:[#allocation13] sm:$0xff]  ;;  %v1430_v55 = vsub.s32 2, %v2215_v49 }
 0x374   :  { %1469 = vadd.xlane.f32.xlu1 %v1468_v60  ;;  %1402 = vadd.xlane.f32.xlu0 %v1401_v61  ;;  %v1386_v56 = vld [vmem:[%s2437_s9] sm:$0xf]  ;;  %v1490_v60 = vsub.s32 3, %v2215_v49 }
 0x375   :  { %1785 = vmatprep.subr.mxu0 %v1590_v45  ;;  %v1427_v61 = vrot.slane %v1386_v56, %v2218_v51  ;;  %v1487_v63 = vrot.slane %v1386_v56, %v2224_v54 }
 0x376   :  { %1786 = vmatpush3.msra.mxu0 %v1574_v46 }
 0x377   :  { %1787 = vmatprep.subr.mxu0 %v1589_v0 }
 0x378   :  { %1788 = vmatpush3.msra.mxu0 %v1573_v47 }
 0x379   :  { %1789 = vmatprep.subr.mxu0 %v1588_v48 }
 0x37a   :  { %1790 = vmatpush3.msra.mxu0 %v1572_v50 }
 0x37b   :  { %1791 = vmatprep.subr.mxu0 %v1587_v52 }
 0x37c   :  { %1792 = vmatpush3.msra.mxu0 %v1571_v53 }
 0x3fd   :  { %v1470_v2 = vpop.xlane.xlu1 %1469  ;;  %v1403_v4 = vpop.xlane.xlu0 %1402 }
 0x3fe   :  { %v1471_v58 = vadd.f32 %v1754_v1, %v1470_v2  ;;  %v1410_v8 = vadd.f32 %v1754_v1, %v1403_v4  ;;  %v1491_v1 = vrot.slane %v1386_v56, %v1490_v60  ;;  %v1387_v2 = vld [vmem:[%s2438_s10] sm:$0x3]  ;;  %v1437_v4 = vrot.slane %v1427_v61, %v2218_v51 }
 0x400   :  { %v1756_v5 = vmul.f32 -1.442695, %v1471_v58  ;;  %v1755_v11 = vmul.f32 -1.442695, %v1410_v8 }
 0x402   :  { %1893 = vpow2.f32 %v1756_v5  ;;  %v1501_v5 = vrot.slane %v1491_v1, %v2224_v54 }
 0x403   :  { %1895 = vpow2.f32 %v1755_v11  ;;  %v1448_v11 = vrot.slane %v1387_v2, %v2218_v51 }
 0x40f   :  { %v1894_v12 = vpop.eup %1893 }
 0x410   :  { %v1896_v13 = vpop.eup %1895  ;;  %v1475_v14 = vadd.f32 1.0, %v1894_v12  ;;  %v1452_v12 = vrot.slane %v1387_v2, %v2224_v54  ;;  %v1910_v2 = vld [vmem:[#allocation2 + $0x9] sm:$0xff] }
 0x411   :  { %v1414_v16 = vadd.f32 1.0, %v1896_v13 }
 0x412   :  { %1897 = vrcp.f32 %v1475_v14 }
 0x413   :  { %1899 = vrcp.f32 %v1414_v16 }
 0x41f   :  { %v1898_v17 = vpop.eup %1897 }
 0x420   :  { %v1900_v19 = vpop.eup %1899  ;;  %v1478_v21 = vmul.f32 %v1898_v17, %v1471_v58 }
 0x421   :  { %v1417_v9 = vmul.f32 %v1900_v19, %v1410_v8  ;;  %v1497_v8 = vrot.slane %v1487_v63, %v2224_v54 }
 0x422   :  { %1481 = vperm.xlu1 %1827, %v1478_v21  }
 0x423   :  { %1420 = vperm.xlu0 %1826, %v1417_v9  }
 0x427   :  { %1828 = vset.pattern.permute.xlu0 %v2080_v62  ;;  %v1431_v62 = vrot.slane %v1386_v56, %v1430_v55  ;;  %v1909_v56 = vld [vmem:[#allocation2 + $0x1] sm:$0xff] }
 0x429   :  { %v1441_v58 = vrot.slane %v1431_v62, %v2218_v51 }
 0x49d   :  { %v1482_v13 = vpop.permute.xlu1 %1481 }
 0x49e   :  { %v1421_v14 = vpop.permute.xlu0 %1420  ;;  %v1502_v19 = vmul.f32 %v1497_v8, %v1482_v13  ;;  %v1503_v21 = vmul.f32 %v1501_v5, %v1482_v13 }
 0x49f   :  { %v1442_v16 = vmul.f32 %v1437_v4, %v1421_v14  ;;  %v1443_v17 = vmul.f32 %v1441_v58, %v1421_v14 }
 0x4a1   :  { %v1455_v9 = vadd.f32 %v1448_v11, %v1442_v16  ;;  %v1456_v20 = vadd.f32 %v1452_v12, %v1443_v17  ;;  %v1911_v12 = vld [vmem:[#allocation2 + $0x19] sm:$0xff]  ;;  %v1912_v17 = vld [vmem:[#allocation2 + $0x21] sm:$0xff] }
 0x4a3   :  { %v1504_v24 = vadd.f32 %v1502_v19, %v1455_v9  ;;  %v1505_v25 = vadd.f32 %v1503_v21, %v1456_v20 }
 0x4a5   :  { %v1757_v26 = vmul.f32 -1.442695, %v1504_v24  ;;  %v1758_v40 = vmul.f32 -1.442695, %v1505_v25 }
 0x4a7   :  { %1901 = vpow2.f32 %v1757_v26 }
 0x4a8   :  { %1903 = vpow2.f32 %v1758_v40 }
 0x4b4   :  { %v1902_v10 = vpop.eup %1901 }
 0x4b5   :  { %v1904_v3 = vpop.eup %1903  ;;  %v1512_v27 = vadd.f32 1.0, %v1902_v10 }
 0x4b6   :  { %v1513_v32 = vadd.f32 1.0, %v1904_v3 }
 0x4b7   :  { %1905 = vrcp.f32 %v1512_v27 }
 0x4b8   :  { %1907 = vrcp.f32 %v1513_v32 }
 0x4c4   :  { %v1906_v31 = vpop.eup %1905 }
 0x4c5   :  { %v1908_v36 = vpop.eup %1907 }
 0x4c6   :  { %v1520_v37 = vcombine.low %v1906_v31, %v1908_v36 }
 0x4c8   :  { %v1527_v35 = vrot.slane %v1520_v37, %v1526_v34 }
 0x4ca   :  { %v1535_v38 = vrot.slane %v1527_v35, %v1526_v34  ;;  %v1528_v39 = vcombine.high %v1527_v35, %v1527_v35 }
 0x4cc   :  { %v1546_v33 = vrot.slane %v1535_v38, %v2218_v51  ;;  %v1550_v41 = vrot.slane %v1535_v38, %v2224_v54  ;;  %v1542_v42 = vrot.slane %v1528_v39, %v1526_v34 }
 0x4ce   :  { %v1564_v43 = vmul.f32 %v1550_v41, %v2338_v18  ;;  %v1563_v44 = vmul.f32 %v1546_v33, %v2320_v57  ;;  %v1566_v45 = vmul.f32 %v1550_v41, %v2335_v15  ;;  %v1558_v46 = vrot.slane %v1542_v42, %v2224_v54 }
 0x4cf   :  { %v1565_v49 = vmul.f32 %v1546_v33, %v2322_v59  ;;  %v1554_v0 = vrot.slane %v1542_v42, %v2218_v51  ;;  %v1759_v59 = vld [vmem:[%s2440_s12] ss:$0 sm:$0xff]  ;;  %s2083_s12 = smov [#allocation15]  }
 0x4d0   :  { %1667 = vmatprep.mubr.f32.mxu0 %v1564_v43  ;;  %v1568_v47 = vmul.f32 %v1558_v46, %v2350_v23  ;;  %v1570_v18 = vmul.f32 %v1558_v46, %v2347_v22  ;;  %v1760_v23 = vld [vmem:[%s2441_s13] ss:$0 sm:$0xff]  ;;  %s1723_s13 = sshll.u32 %s2083_s12, 4  ;;  %s1724_s13 = int_to_ptr.vmem [resolvable:$true] %s1723_s13 }
 0x4d1   :  { %1668 = vmatmul.mubr.f32.vlgmr.msra.gmra.mxu0 %v1563_v44  ;;  %v1567_v48 = vmul.f32 %v1554_v0, %v2326_v6  ;;  %v1569_v57 = vmul.f32 %v1554_v0, %v2328_v7  ;;  %s2033_s26 = scalar_lea.vmem %s1724_s13, 512  ;;  %p2038_p3 = scmp.lt.s32.totalorder %s1724_s13, %s1724_s13 }
 0x4d2   :  { %1672 = vmatprep.mubr.f32.mxu0 %v1566_v45  ;;  %p2034_p2 = scmp.ne.s32.totalorder %s1724_s13, %s2033_s26  ;;  %p2039_p4 = scmp.lt.s32.totalorder %s2033_s26, %s2033_s26 }
 0x4d4   :  { %p2040_p5 = por %p2039_p4, %p2038_p3 }
 0x4d5   :  { %1673 = vmatmul.mubr.f32.gmra.mxu0 %v1565_v49 }
 0x4d6   :  { %1677 = vmatprep.mubr.f32.mxu0 %v1568_v47  ;;  %p2041_p6 = pnand %p2040_p5, %p2034_p2 }
 0x4d9   :  { %1678 = vmatmul.mubr.f32.gmra.mxu0 %v1567_v48 }
 0x4da   :  { %1682 = vmatprep.mubr.f32.mxu0 %v1570_v18 }
 0x4dd   :  { %1683 = vmatmul.mubr.f32.gmra.mxu0 %v1569_v57 }
 0x591   :  { %v1793_v54 = vpop.f32.mrf.mxu0 }
 0x593   :  { %v1794_v15 = vpop.f32.mrf.mxu0 }
 0x594   :  { %v1795_v51 = vadd.f32 %v1794_v15, %v1793_v54 }
 0x595   :  { %v1796_v50 = vpop.f32.mrf.mxu0 }
 0x596   :  { %v1695_v6 = vmul.f32 %v1795_v51, %v1759_v59 }
 0x597   :  { %v1797_v52 = vpop.f32.mrf.mxu0 }
 0x598   :  { %v1706_v22 = vadd.f32 %v1760_v23, %v1695_v6  ;;  %v1798_v53 = vadd.f32 %v1797_v52, %v1796_v50 }
 0x599   :  { %v1799_v55 = vpop.f32.mrf.mxu0 }
 0x59a   :  { %v1710_v7 = vadd.f32 %v1909_v56, %v1706_v22  ;;  %v1696_v60 = vmul.f32 %v1798_v53, %v1759_v59 }
 0x59b   :  { %v1800_v61 = vpop.f32.mrf.mxu0 }
 0x59c   :  { %1714 = vst [vmem:[#allocation15] sm:$0xff] %v1710_v7  ;;  %v1707_v62 = vadd.f32 %v1760_v23, %v1696_v60  ;;  %v1801_v63 = vadd.f32 %v1800_v61, %v1799_v55 }
 0x59d   :  { %v1802_v1 = vpop.f32.mrf.mxu0 }
 0x59e   :  { %v1711_v4 = vadd.f32 %v1910_v2, %v1707_v62  ;;  %v1697_v58 = vmul.f32 %v1801_v63, %v1759_v59 }
 0x59f   :  { %v1803_v8 = vpop.f32.mrf.mxu0 }
 0x5a0   :  { %1715 = vst [vmem:[#allocation15 + $0x8] sm:$0xff] %v1711_v4  ;;  %v1708_v5 = vadd.f32 %v1760_v23, %v1697_v58  ;;  %v1804_v11 = vadd.f32 %v1803_v8, %v1802_v1 }
 0x5a2   :  { %v1712_v13 = vadd.f32 %v1911_v12, %v1708_v5  ;;  %v1698_v14 = vmul.f32 %v1804_v11, %v1759_v59 }
 0x5a4   :  { %1716 = vst [vmem:[#allocation15 + $0x10] sm:$0xff] %v1712_v13  ;;  %v1709_v16 = vadd.f32 %v1760_v23, %v1698_v14 }
 0x5a6   :  { %v1713_v19 = vadd.f32 %v1912_v17, %v1709_v16 }
 0x5a8   :  { %1717 = vst [vmem:[#allocation15 + $0x18] sm:$0xff] %v1713_v19 }
 0x5a9   :  { %2044 = shalt.err (!%p2041_p6)
}
 0x5aa   :  { %1729 = dma.vmem_to_hbm [thread:$0]  %s1724_s13, 512, %s2442_s14, [#allocation6], %s2068_s1, %s2068_s1, %s2069_s28  }
 0x5ab   :  { %2061 = dma.done.wait [#allocation6], 512  }
 0x5ac   :  { %2062 = vsyncadd [#allocation6], 4294966784 }
 0x5ad   :  { %1733 = vsyncpa [#allocation5], 1 }
 0x5ae   :  { %1734 = vsyncpa [#allocation8], 1 }
 0x5af   :  { %1735 = vsyncpa [#allocation11], 1 }
 0x5b0   :  { %1736 = vsyncpa [#allocation14], 1 }
 0x5b1   :  { %1737 = vsyncpa [#allocation6], 1 }

</bundles_post_ra>
